<compile_context>
chip_gen: v5e
topology: v5e:2x2
jax: 0.10.0
libtpu: 0.0.40
codegen_flags: <defaults>
</compile_context>

<pallas_src>
import functools

import jax
import jax.numpy as jnp
from jax import lax
from jax.experimental import pallas as pl
from jax.experimental.pallas import tpu as pltpu

NEG_INF = -1e9  # stand-in for Constants.NEG_INF (finite so fully-masked rows stay finite)


def _round_up(x, m):
    return ((x + m - 1) // m) * m


def _cdiv(a, b):
    return -(-a // b)


def _pad_to(x, shape):
    pads = [(0, t - s) for s, t in zip(x.shape, shape)]
    return jnp.pad(x, pads) if any(p[1] for p in pads) else x


def _tpu_vmem_capacity_bytes():
    try:
        return int(pltpu.get_tpu_info().vmem_capacity_bytes)
    except Exception:
        return 64 * 1024 * 1024  # conservative (v7x per-TensorCore VMEM)


def attention_kernel(qlen_ref, clen_ref,                       # (TB, 1) int32 in VMEM
                     q_ref, c_ref,                             # (TB, TQ, Hp) / (TB, Kp, Hp)
                     w_in_ref, w_out_mix_ref, w_out_q_ref,     # (Hp, Hp) each
                     out_ref, *scores_refs,                    # (TB, TQ, Hp) [, (TB, TQ, Kp)]
                     l_ctx_real, approx_recip):
    TB, TQ, Hp = q_ref.shape
    Kp = c_ref.shape[1]
    t = pl.program_id(1)
    compute_dtype = w_in_ref.dtype

    q = q_ref[...]                                   # (TB, TQ, Hp), compute dtype
    c = c_ref[...]                                   # (TB, Kp, Hp), compute dtype

    # linear_in ('general'): flatten batch*rows so the shared-weight matmul sees big M.
    qp_f32 = jnp.dot(q.reshape(TB * TQ, Hp), w_in_ref[...],
                     preferred_element_type=jnp.float32)        # (TB*TQ, Hp) f32
    qp_c = qp_f32.astype(compute_dtype)                          # cast once, reused twice

    # attention scores: batched contraction over the hidden dim (no explicit transpose).
    # equivalent to einsum('bqh,bkh->bqk')
    s = lax.dot_general(qp_c.reshape(TB, TQ, Hp), c,
                        dimension_numbers=(((2,), (2,)), ((0,), (0,))),
                        preferred_element_type=jnp.float32)     # (TB, TQ, Kp) f32

    # length masking (the pack/pad round-trips with padding_value=NEG_INF).
    # Small iotas broadcast inside the where — no full-size int32 temporaries.
    qlen = qlen_ref[...].reshape(TB, 1, 1)
    clen = clen_ref[...].reshape(TB, 1, 1)
    row_ids = t * TQ + lax.broadcasted_iota(jnp.int32, (1, TQ, 1), 1)   # (1, TQ, 1)
    col_ids = lax.broadcasted_iota(jnp.int32, (1, 1, Kp), 2)            # (1, 1, Kp)
    valid = (row_ids < qlen) & (col_ids < clen)
    s = jnp.where(valid, s, NEG_INF)

    if scores_refs:
        scores_refs[0][...] = s.astype(scores_refs[0].dtype)

    # softmax over the (real) context columns (dim=2 in torch).  Padded columns are
    # zeroed out of the exp so fully-masked rows match the un-padded reference.
    m = jnp.max(s, axis=-1, keepdims=True)
    e = jnp.exp(s - m)
    e = jnp.where(col_ids < l_ctx_real, e, 0.0)
    denom = jnp.sum(e, axis=-1, keepdims=True)
    if approx_recip:
        w = e * pl.reciprocal(denom, approx=True)   # EUP slot; bf16 fast path only
    else:
        w = e / denom                               # exact divide for f32 parity path

    # mix = weights @ context  (batched); equivalent to einsum('bqk,bkh->bqh')
    mix = lax.dot_general(w.astype(compute_dtype), c,
                          dimension_numbers=(((2,), (1,)), ((0,), (0,))),
                          preferred_element_type=jnp.float32)   # (TB, TQ, Hp) f32

    # linear_out on cat(mix, q') — concat folded into two shared-weight matmuls — then tanh.
    out_flat = jnp.tanh(
        jnp.dot(mix.reshape(TB * TQ, Hp).astype(compute_dtype), w_out_mix_ref[...],
                preferred_element_type=jnp.float32)
        + jnp.dot(qp_c, w_out_q_ref[...], preferred_element_type=jnp.float32))
    out_ref[...] = out_flat.reshape(TB, TQ, Hp).astype(out_ref.dtype)


def attention_forward(query, context, query_lengths, context_lengths, w_in, w_out,
                      *, compute_dtype=jnp.bfloat16, scores_dtype=jnp.bfloat16,
                      return_scores=True, block_b=8, block_q=512):
    B, L_out, H = query.shape
    _, L_ctx, _ = context.shape
    assert context.shape[0] == B and w_in.shape == (H, H) and w_out.shape == (H, 2 * H)

    # Lane-dense padding (last dims multiples of 128, row dims multiples of 8).
    Hp = _round_up(H, 128)
    Kp = _round_up(L_ctx, 128)

    cbytes = jnp.dtype(compute_dtype).itemsize
    sbytes = jnp.dtype(scores_dtype).itemsize if return_scores else 0
    obytes = jnp.dtype(query.dtype).itemsize

    vmem_cap = _tpu_vmem_capacity_bytes()
    # Generation-aware block budget: ~96 MiB on 128-MiB v5e/v6e, ~48 MiB on 64-MiB v7x.
    budget = min(int(0.75 * vmem_cap), 100 * 1024 * 1024)

    def est(tb, tq, ctx_bufs, w_bufs):
        return (2 * tb * tq * Hp * cbytes            # query tiles (double-buffered)
                + ctx_bufs * tb * Kp * Hp * cbytes   # context tiles
                + 2 * tb * tq * Hp * obytes          # out tiles
                + 2 * tb * tq * Kp * sbytes          # scores tiles (if emitted)
                + 3 * w_bufs * Hp * Hp * cbytes      # weight tiles
                + 4 * tb * tq * Kp * 4               # f32 score/exp/mask/weight temporaries
                + 4 * tb * tq * Hp * 4               # f32 qp/mix/out temporaries
                + 64 * 1024)                         # lengths + misc

    def choose_tiles(w_bufs, allow_ctx_single):
        tb = max(1, min(block_b, B))
        # Pick TQ so Lp = round_up(L_out, TQ) padding stays tight (no 2x blowup for
        # L_out just above a multiple of block_q).
        nt = max(1, _cdiv(L_out, max(8, block_q)))
        tq = _round_up(_cdiv(L_out, nt), 8)
        ctx_bufs = 2
        # VMEM relief order: single-buffer context, then shrink TQ, then shrink TB.
        if allow_ctx_single and est(tb, tq, ctx_bufs, w_bufs) > budget:
            ctx_bufs = 1
        while est(tb, tq, ctx_bufs, w_bufs) > budget and tq > 8:
            nt *= 2
            tq = max(8, _round_up(_cdiv(L_out, nt), 8))
        while est(tb, tq, ctx_bufs, w_bufs) > budget and tb > 1:
            tb = max(1, tb // 2)
        return tb, tq, ctx_bufs

    def build_and_run(use_pipeline_mode):
        w_bufs = 1 if use_pipeline_mode else 2
        TB, TQ, ctx_bufs = choose_tiles(w_bufs, allow_ctx_single=use_pipeline_mode)
        Bp = _round_up(B, TB)
        Lp = _round_up(L_out, TQ)

        q_p = _pad_to(query, (Bp, Lp, Hp)).astype(compute_dtype)
        c_p = _pad_to(context, (Bp, Kp, Hp)).astype(compute_dtype)
        w_in_T = _pad_to(w_in.T, (Hp, Hp)).astype(compute_dtype)      # q @ w_in^T == linear_in(q)
        w_out_T = w_out.T                                             # (2H, H)
        w_out_mix = _pad_to(w_out_T[:H], (Hp, Hp)).astype(compute_dtype)  # acts on `mix`
        w_out_q = _pad_to(w_out_T[H:], (Hp, Hp)).astype(compute_dtype)    # acts on projected query
        qlen = _pad_to(query_lengths.astype(jnp.int32).reshape(B, 1), (Bp, 1))
        clen = _pad_to(context_lengths.astype(jnp.int32).reshape(B, 1), (Bp, 1))

        grid = (Bp // TB, Lp // TQ)
        # Prefer a megacore split along the batch axis so both TensorCores don't DMA
        # the same context block; fall back to splitting the row-tile axis otherwise.
        dims = ("parallel", "arbitrary") if grid[0] >= 2 else ("arbitrary", "parallel")

        def spec(shape, index_map, single_buffer=False):
            if use_pipeline_mode and single_buffer:
                return pl.BlockSpec(shape, index_map, pipeline_mode=pl.Buffered(1))
            return pl.BlockSpec(shape, index_map)

        in_specs = [
            pl.BlockSpec((TB, 1), lambda g, t: (g, 0)),                 # query_lengths
            pl.BlockSpec((TB, 1), lambda g, t: (g, 0)),                 # context_lengths
            pl.BlockSpec((TB, TQ, Hp), lambda g, t: (g, t, 0)),         # query tile
            spec((TB, Kp, Hp), lambda g, t: (g, 0, 0),
                 single_buffer=(ctx_bufs == 1)),                        # context (resident over t)
            spec((Hp, Hp), lambda g, t: (0, 0), single_buffer=True),    # w_in^T   (constant)
            spec((Hp, Hp), lambda g, t: (0, 0), single_buffer=True),    # w_out[:H]^T
            spec((Hp, Hp), lambda g, t: (0, 0), single_buffer=True),    # w_out[H:]^T
        ]
        out_spec_o = pl.BlockSpec((TB, TQ, Hp), lambda g, t: (g, t, 0))
        shape_o = jax.ShapeDtypeStruct((Bp, Lp, Hp), query.dtype)
        if return_scores:
            out_specs = [out_spec_o, pl.BlockSpec((TB, TQ, Kp), lambda g, t: (g, t, 0))]
            out_shape = (shape_o, jax.ShapeDtypeStruct((Bp, Lp, Kp), scores_dtype))
        else:
            out_specs = out_spec_o
            out_shape = shape_o

        vmem_limit = int(min(vmem_cap - 8 * 1024 * 1024,
                             max(32 * 1024 * 1024, 2 * est(TB, TQ, ctx_bufs, w_bufs))))

        kernel = functools.partial(
            attention_kernel, l_ctx_real=L_ctx,
            approx_recip=(jnp.dtype(compute_dtype) != jnp.dtype(jnp.float32)))

        grid_spec = pltpu.PrefetchScalarGridSpec(
            num_scalar_prefetch=0, grid=grid,
            in_specs=in_specs, out_specs=out_specs)

        return pl.pallas_call(
            kernel,
            grid_spec=grid_spec,
            out_shape=out_shape,
            compiler_params=pltpu.CompilerParams(
                dimension_semantics=dims, vmem_limit_bytes=vmem_limit),
        )(qlen, clen, q_p, c_p, w_in_T, w_out_mix, w_out_q)

    try:
        results = build_and_run(use_pipeline_mode=True)
    except Exception:
        # Fallback for jax builds that reject pipeline_mode=pl.Buffered(1):
        # identical kernel, fully double-buffered blocks, conservative tiling.
        results = build_and_run(use_pipeline_mode=False)

    if return_scores:
        out_p, scores_p = results
        return out_p[:B, :L_out, :H], scores_p[:B, :L_out, :L_ctx]
    return results[:B, :L_out, :H]


def attention_reference(query, context, query_lengths, context_lengths, w_in, w_out):
    B, L_out, H = query.shape
    _, L_ctx, _ = context.shape
    qp = jnp.einsum("bld,hd->blh", query, w_in)               # linear_in
    s = jnp.einsum("blh,bch->blc", qp, context)
    rows = jnp.arange(L_out)[None, :, None]
    cols = jnp.arange(L_ctx)[None, None, :]
    mask = (rows < query_lengths[:, None, None]) & (cols < context_lengths[:, None, None])
    s = jnp.where(mask, s, NEG_INF)
    w = jax.nn.softmax(s, axis=-1)
    mix = jnp.einsum("blc,bch->blh", w, context)
    combined = jnp.concatenate([mix, qp], axis=-1)
    out = jnp.tanh(jnp.einsum("blk,hk->blh", combined, w_out))  # linear_out
    return out, s


if __name__ == "__main__":
    B, L_out, L_ctx, H = 2, 8, 8, 32

    key = jax.random.PRNGKey(0)
    k_q, k_c, k_win, k_wout = jax.random.split(key, 4)
    query = jax.random.normal(k_q, (B, L_out, H), dtype=jnp.float32)
    context = jax.random.normal(k_c, (B, L_ctx, H), dtype=jnp.float32)
    # nn.Linear(h,h,bias=False) and nn.Linear(2h,h,bias=False) weights
    w_in = 0.1 * jax.random.normal(k_win, (H, H), dtype=jnp.float32)
    w_out = 0.1 * jax.random.normal(k_wout, (H, 2 * H), dtype=jnp.float32)

    query_lengths = jnp.array([L_out, 5], dtype=jnp.int32)
    context_lengths = jnp.array([L_ctx, 6], dtype=jnp.int32)

    ref_out, ref_scores = attention_reference(query, context, query_lengths,
                                              context_lengths, w_in, w_out)

    # Exact-precision path (f32 MXU operands, exact softmax divide) — original semantics.
    out32, sc32 = attention_forward(query, context, query_lengths, context_lengths,
                                    w_in, w_out, compute_dtype=jnp.float32,
                                    scores_dtype=jnp.float32)
    out32 = jax.block_until_ready(out32)
    sc32 = jax.block_until_ready(sc32)
    assert out32.shape == (B, L_out, H)
    assert sc32.shape == (B, L_out, L_ctx)
    assert jnp.allclose(out32, ref_out, rtol=2e-3, atol=2e-3)
    assert jnp.allclose(sc32, ref_scores, rtol=1e-3, atol=1e-3)

    # Fast path (bf16 MXU operands + bf16 scores output) — looser tolerance by design.
    out16, sc16 = attention_forward(query, context, query_lengths, context_lengths,
                                    w_in, w_out)
    out16 = jax.block_until_ready(out16)
    sc16 = jax.block_until_ready(sc16)
    assert out16.shape == (B, L_out, H)
    assert sc16.shape == (B, L_out, L_ctx)
    assert jnp.allclose(out16, ref_out, rtol=5e-2, atol=5e-2)
    assert jnp.allclose(sc16.astype(jnp.float32), ref_scores, rtol=5e-2, atol=1e-1)

    # Scores-free path (skips the dominant HBM output stream entirely).
    out_ns = attention_forward(query, context, query_lengths, context_lengths,
                               w_in, w_out, return_scores=False)
    out_ns = jax.block_until_ready(out_ns)
    assert out_ns.shape == (B, L_out, H)
    assert jnp.allclose(out_ns, ref_out, rtol=5e-2, atol=5e-2)

    print("KERNEL_OK")
</pallas_src>

<mosaic_0001>
module attributes {stable_mosaic.version = 11 : i64} {
  func.func @attention_kernel(%arg0: i32, %arg1: i32, %arg2: memref<2x1xi32, #tpu.memory_space<vmem>>, %arg3: memref<2x1xi32, #tpu.memory_space<vmem>>, %arg4: memref<2x8x128xf32, #tpu.memory_space<vmem>>, %arg5: memref<2x128x128xf32, #tpu.memory_space<vmem>>, %arg6: memref<128x128xf32, #tpu.memory_space<vmem>>, %arg7: memref<128x128xf32, #tpu.memory_space<vmem>>, %arg8: memref<128x128xf32, #tpu.memory_space<vmem>>, %arg9: memref<2x8x128xf32, #tpu.memory_space<vmem>>, %arg10: memref<2x8x128xf32, #tpu.memory_space<vmem>>) attributes {dimension_semantics = [#tpu.dimension_semantics<arbitrary>, #tpu.dimension_semantics<parallel>], iteration_bounds = array<i64: 1, 1>, scalar_prefetch = 0 : i64, scratch_operands = 0 : i64, tpu.core_type = #tpu.core_type<tc>, window_params = [{transform_indices = @transform_0, window_bounds = array<i64: 2, 1>}, {transform_indices = @transform_1, window_bounds = array<i64: 2, 1>}, {transform_indices = @transform_2, window_bounds = array<i64: 2, 8, 128>}, {transform_indices = @transform_3, window_bounds = array<i64: 2, 128, 128>}, {pipeline_mode = #tpu.pipeline_mode<synchronous>, transform_indices = @transform_4, window_bounds = array<i64: 128, 128>}, {pipeline_mode = #tpu.pipeline_mode<synchronous>, transform_indices = @transform_5, window_bounds = array<i64: 128, 128>}, {pipeline_mode = #tpu.pipeline_mode<synchronous>, transform_indices = @transform_6, window_bounds = array<i64: 128, 128>}, {transform_indices = @transform_7, window_bounds = array<i64: 2, 8, 128>}, {transform_indices = @transform_8, window_bounds = array<i64: 2, 8, 128>}]} {
    %c0 = arith.constant 0 : index
    %c0_0 = arith.constant 0 : index
    %c0_1 = arith.constant 0 : index
    %0 = vector.load %arg4[%c0, %c0_0, %c0_1] : memref<2x8x128xf32, #tpu.memory_space<vmem>>, vector<2x8x128xf32>
    %c0_2 = arith.constant 0 : index
    %c0_3 = arith.constant 0 : index
    %c0_4 = arith.constant 0 : index
    %1 = vector.load %arg5[%c0_2, %c0_3, %c0_4] : memref<2x128x128xf32, #tpu.memory_space<vmem>>, vector<2x128x128xf32>
    %2 = vector.shape_cast %0 : vector<2x8x128xf32> to vector<16x128xf32>
    %c0_5 = arith.constant 0 : index
    %c0_6 = arith.constant 0 : index
    %3 = vector.load %arg6[%c0_5, %c0_6] : memref<128x128xf32, #tpu.memory_space<vmem>>, vector<128x128xf32>
    %cst = arith.constant dense<0.000000e+00> : vector<16x128xf32>
    %4 = tpu.matmul %2, %3, %cst {dimension_numbers = #tpu.dot_dimension_numbers<[1], [0], [0], [1], [0, 0, 1, 1], [], []>} : vector<16x128xf32>, vector<128x128xf32>, vector<16x128xf32> -> vector<16x128xf32>
    %5 = vector.shape_cast %4 : vector<16x128xf32> to vector<2x8x128xf32>
    %cst_7 = arith.constant dense<0.000000e+00> : vector<2x8x128xf32>
    %6 = tpu.matmul %5, %1, %cst_7 {dimension_numbers = #tpu.dot_dimension_numbers<[2], [2], [1], [1], [0, 0, 0, 1, 1, 1], [0], [0]>} : vector<2x8x128xf32>, vector<2x128x128xf32>, vector<2x8x128xf32> -> vector<2x8x128xf32>
    %c0_8 = arith.constant 0 : index
    %c0_9 = arith.constant 0 : index
    %7 = vector.load %arg2[%c0_8, %c0_9] : memref<2x1xi32, #tpu.memory_space<vmem>>, vector<2x1xi32>
    %8 = vector.shape_cast %7 : vector<2x1xi32> to vector<2x1x1xi32>
    %c0_10 = arith.constant 0 : index
    %c0_11 = arith.constant 0 : index
    %9 = vector.load %arg3[%c0_10, %c0_11] : memref<2x1xi32, #tpu.memory_space<vmem>>, vector<2x1xi32>
    %10 = vector.shape_cast %9 : vector<2x1xi32> to vector<2x1x1xi32>
    %c8_i32 = arith.constant 8 : i32
    %11 = arith.muli %arg1, %c8_i32 : i32
    %12 = tpu.iota {dimensions = array<i32: 1>} : vector<1x8x1xi32>
    %13 = vector.broadcast %11 : i32 to vector<1x8x1xi32>
    %14 = arith.addi %13, %12 : vector<1x8x1xi32>
    %15 = tpu.iota {dimensions = array<i32: 2>} : vector<1x1x128xi32>
    %16 = vector.broadcast %14 : vector<1x8x1xi32> to vector<2x8x1xi32>
    %17 = vector.broadcast %8 : vector<2x1x1xi32> to vector<2x8x1xi32>
    %18 = arith.cmpi slt, %16, %17 : vector<2x8x1xi32>
    %19 = vector.broadcast %15 : vector<1x1x128xi32> to vector<2x1x128xi32>
    %20 = vector.broadcast %10 : vector<2x1x1xi32> to vector<2x1x128xi32>
    %21 = arith.cmpi slt, %19, %20 : vector<2x1x128xi32>
    %22 = vector.broadcast %18 : vector<2x8x1xi1> to vector<2x8x128xi1>
    %23 = vector.broadcast %21 : vector<2x1x128xi1> to vector<2x8x128xi1>
    %24 = arith.andi %22, %23 : vector<2x8x128xi1>
    %cst_12 = arith.constant -1.000000e+09 : f32
    %25 = vector.broadcast %cst_12 : f32 to vector<2x8x128xf32>
    %26 = arith.select %24, %6, %25 : vector<2x8x128xi1>, vector<2x8x128xf32>
    %c0_13 = arith.constant 0 : index
    %c0_14 = arith.constant 0 : index
    %c0_15 = arith.constant 0 : index
    %27 = vector.load %arg10[%c0_13, %c0_14, %c0_15] : memref<2x8x128xf32, #tpu.memory_space<vmem>>, vector<2x8x128xf32>
    tpu.vector_store %arg10[%c0_13, %c0_14, %c0_15], %26 {strides = array<i32>} : memref<2x8x128xf32, #tpu.memory_space<vmem>>, vector<2x8x128xf32>,
    %cst_16 = arith.constant dense<0xFF800000> : vector<2x8xf32>
    %28 = vector.multi_reduction <maximumf>, %26, %cst_16 [2] : vector<2x8x128xf32> to vector<2x8xf32>
    %29 = vector.shape_cast %28 : vector<2x8xf32> to vector<2x8x1xf32>
    %30 = vector.broadcast %29 : vector<2x8x1xf32> to vector<2x8x128xf32>
    %31 = arith.subf %26, %30 : vector<2x8x128xf32>
    %32 = math.exp %31 : vector<2x8x128xf32>
    %c8_i32_17 = arith.constant 8 : i32
    %33 = vector.broadcast %c8_i32_17 : i32 to vector<1x1x128xi32>
    %34 = arith.cmpi slt, %15, %33 : vector<1x1x128xi32>
    %cst_18 = arith.constant 0.000000e+00 : f32
    %35 = vector.shape_cast %34 : vector<1x1x128xi1> to vector<1x1x128xi1>
    %36 = vector.broadcast %35 : vector<1x1x128xi1> to vector<2x8x128xi1>
    %37 = vector.broadcast %cst_18 : f32 to vector<2x8x128xf32>
    %38 = arith.select %36, %32, %37 : vector<2x8x128xi1>, vector<2x8x128xf32>
    %cst_19 = arith.constant dense<0.000000e+00> : vector<2x8xf32>
    %39 = vector.multi_reduction <add>, %38, %cst_19 [2] : vector<2x8x128xf32> to vector<2x8xf32>
    %40 = vector.shape_cast %39 : vector<2x8xf32> to vector<2x8x1xf32>
    %41 = vector.broadcast %40 : vector<2x8x1xf32> to vector<2x8x128xf32>
    %42 = arith.divf %38, %41 : vector<2x8x128xf32>
    %cst_20 = arith.constant dense<0.000000e+00> : vector<2x8x128xf32>
    %43 = tpu.matmul %42, %1, %cst_20 {dimension_numbers = #tpu.dot_dimension_numbers<[2], [1], [1], [2], [0, 0, 0, 1, 1, 2], [0], [0]>} : vector<2x8x128xf32>, vector<2x128x128xf32>, vector<2x8x128xf32> -> vector<2x8x128xf32>
    %44 = vector.shape_cast %43 : vector<2x8x128xf32> to vector<16x128xf32>
    %c0_21 = arith.constant 0 : index
    %c0_22 = arith.constant 0 : index
    %45 = vector.load %arg7[%c0_21, %c0_22] : memref<128x128xf32, #tpu.memory_space<vmem>>, vector<128x128xf32>
    %cst_23 = arith.constant dense<0.000000e+00> : vector<16x128xf32>
    %46 = tpu.matmul %44, %45, %cst_23 {dimension_numbers = #tpu.dot_dimension_numbers<[1], [0], [0], [1], [0, 0, 1, 1], [], []>} : vector<16x128xf32>, vector<128x128xf32>, vector<16x128xf32> -> vector<16x128xf32>
    %c0_24 = arith.constant 0 : index
    %c0_25 = arith.constant 0 : index
    %47 = vector.load %arg8[%c0_24, %c0_25] : memref<128x128xf32, #tpu.memory_space<vmem>>, vector<128x128xf32>
    %cst_26 = arith.constant dense<0.000000e+00> : vector<16x128xf32>
    %48 = tpu.matmul %4, %47, %cst_26 {dimension_numbers = #tpu.dot_dimension_numbers<[1], [0], [0], [1], [0, 0, 1, 1], [], []>} : vector<16x128xf32>, vector<128x128xf32>, vector<16x128xf32> -> vector<16x128xf32>
    %49 = arith.addf %46, %48 : vector<16x128xf32>
    %50 = math.tanh %49 : vector<16x128xf32>
    %51 = vector.shape_cast %50 : vector<16x128xf32> to vector<2x8x128xf32>
    %c0_27 = arith.constant 0 : index
    %c0_28 = arith.constant 0 : index
    %c0_29 = arith.constant 0 : index
    %52 = vector.load %arg9[%c0_27, %c0_28, %c0_29] : memref<2x8x128xf32, #tpu.memory_space<vmem>>, vector<2x8x128xf32>
    tpu.vector_store %arg9[%c0_27, %c0_28, %c0_29], %51 {strides = array<i32>} : memref<2x8x128xf32, #tpu.memory_space<vmem>>, vector<2x8x128xf32>,
    return
  }
  func.func @transform_0(%arg0: i32, %arg1: i32) -> (i32, i32) {
    %c0_i32 = arith.constant 0 : i32
    %c0_i32_0 = arith.constant 0 : i32
    return %arg0, %c0_i32 : i32, i32
  }
  func.func @transform_1(%arg0: i32, %arg1: i32) -> (i32, i32) {
    %c0_i32 = arith.constant 0 : i32
    %c0_i32_0 = arith.constant 0 : i32
    return %arg0, %c0_i32 : i32, i32
  }
  func.func @transform_2(%arg0: i32, %arg1: i32) -> (i32, i32, i32) {
    %c0_i32 = arith.constant 0 : i32
    %c0_i32_0 = arith.constant 0 : i32
    return %arg0, %arg1, %c0_i32 : i32, i32, i32
  }
  func.func @transform_3(%arg0: i32, %arg1: i32) -> (i32, i32, i32) {
    %c0_i32 = arith.constant 0 : i32
    %c0_i32_0 = arith.constant 0 : i32
    %c0_i32_1 = arith.constant 0 : i32
    return %arg0, %c0_i32, %c0_i32_0 : i32, i32, i32
  }
  func.func @transform_4(%arg0: i32, %arg1: i32) -> (i32, i32) {
    %c0_i32 = arith.constant 0 : i32
    %c0_i32_0 = arith.constant 0 : i32
    %c0_i32_1 = arith.constant 0 : i32
    return %c0_i32, %c0_i32_0 : i32, i32
  }
  func.func @transform_5(%arg0: i32, %arg1: i32) -> (i32, i32) {
    %c0_i32 = arith.constant 0 : i32
    %c0_i32_0 = arith.constant 0 : i32
    %c0_i32_1 = arith.constant 0 : i32
    return %c0_i32, %c0_i32_0 : i32, i32
  }
  func.func @transform_6(%arg0: i32, %arg1: i32) -> (i32, i32) {
    %c0_i32 = arith.constant 0 : i32
    %c0_i32_0 = arith.constant 0 : i32
    %c0_i32_1 = arith.constant 0 : i32
    return %c0_i32, %c0_i32_0 : i32, i32
  }
  func.func @transform_7(%arg0: i32, %arg1: i32) -> (i32, i32, i32) {
    %c0_i32 = arith.constant 0 : i32
    %c0_i32_0 = arith.constant 0 : i32
    return %arg0, %arg1, %c0_i32 : i32, i32, i32
  }
  func.func @transform_8(%arg0: i32, %arg1: i32) -> (i32, i32, i32) {
    %c0_i32 = arith.constant 0 : i32
    %c0_i32_0 = arith.constant 0 : i32
    return %arg0, %arg1, %c0_i32 : i32, i32, i32
  }
}

module attributes {stable_mosaic.version = 11 : i64} {
  func.func @attention_kernel(%arg0: i32, %arg1: i32, %arg2: memref<2x1xi32, #tpu.memory_space<vmem>>, %arg3: memref<2x1xi32, #tpu.memory_space<vmem>>, %arg4: memref<2x8x128xf32, #tpu.memory_space<vmem>>, %arg5: memref<2x128x128xf32, #tpu.memory_space<vmem>>, %arg6: memref<128x128xf32, #tpu.memory_space<vmem>>, %arg7: memref<128x128xf32, #tpu.memory_space<vmem>>, %arg8: memref<128x128xf32, #tpu.memory_space<vmem>>, %arg9: memref<2x8x128xf32, #tpu.memory_space<vmem>>, %arg10: memref<2x8x128xf32, #tpu.memory_space<vmem>>) attributes {dimension_semantics = [#tpu.dimension_semantics<arbitrary>, #tpu.dimension_semantics<parallel>], iteration_bounds = array<i64: 1, 1>, scalar_prefetch = 0 : i64, scratch_operands = 0 : i64, tpu.core_type = #tpu.core_type<tc>, window_params = [{transform_indices = @transform_0, window_bounds = array<i64: 2, 1>}, {transform_indices = @transform_1, window_bounds = array<i64: 2, 1>}, {transform_indices = @transform_2, window_bounds = array<i64: 2, 8, 128>}, {transform_indices = @transform_3, window_bounds = array<i64: 2, 128, 128>}, {pipeline_mode = #tpu.pipeline_mode<synchronous>, transform_indices = @transform_4, window_bounds = array<i64: 128, 128>}, {pipeline_mode = #tpu.pipeline_mode<synchronous>, transform_indices = @transform_5, window_bounds = array<i64: 128, 128>}, {pipeline_mode = #tpu.pipeline_mode<synchronous>, transform_indices = @transform_6, window_bounds = array<i64: 128, 128>}, {transform_indices = @transform_7, window_bounds = array<i64: 2, 8, 128>}, {transform_indices = @transform_8, window_bounds = array<i64: 2, 8, 128>}]} {
    %c0 = arith.constant 0 : index
    %c0_0 = arith.constant 0 : index
    %c0_1 = arith.constant 0 : index
    %0 = vector.load %arg4[%c0, %c0_0, %c0_1] : memref<2x8x128xf32, #tpu.memory_space<vmem>>, vector<2x8x128xf32>
    %c0_2 = arith.constant 0 : index
    %c0_3 = arith.constant 0 : index
    %c0_4 = arith.constant 0 : index
    %1 = vector.load %arg5[%c0_2, %c0_3, %c0_4] : memref<2x128x128xf32, #tpu.memory_space<vmem>>, vector<2x128x128xf32>
    %2 = vector.shape_cast %0 : vector<2x8x128xf32> to vector<16x128xf32>
    %c0_5 = arith.constant 0 : index
    %c0_6 = arith.constant 0 : index
    %3 = vector.load %arg6[%c0_5, %c0_6] : memref<128x128xf32, #tpu.memory_space<vmem>>, vector<128x128xf32>
    %cst = arith.constant dense<0.000000e+00> : vector<16x128xf32>
    %4 = tpu.matmul %2, %3, %cst {dimension_numbers = #tpu.dot_dimension_numbers<[1], [0], [0], [1], [0, 0, 1, 1], [], []>} : vector<16x128xf32>, vector<128x128xf32>, vector<16x128xf32> -> vector<16x128xf32>
    %5 = vector.shape_cast %4 : vector<16x128xf32> to vector<2x8x128xf32>
    %cst_7 = arith.constant dense<0.000000e+00> : vector<2x8x128xf32>
    %6 = tpu.matmul %5, %1, %cst_7 {dimension_numbers = #tpu.dot_dimension_numbers<[2], [2], [1], [1], [0, 0, 0, 1, 1, 1], [0], [0]>} : vector<2x8x128xf32>, vector<2x128x128xf32>, vector<2x8x128xf32> -> vector<2x8x128xf32>
    %c0_8 = arith.constant 0 : index
    %c0_9 = arith.constant 0 : index
    %7 = vector.load %arg2[%c0_8, %c0_9] : memref<2x1xi32, #tpu.memory_space<vmem>>, vector<2x1xi32>
    %8 = vector.shape_cast %7 : vector<2x1xi32> to vector<2x1x1xi32>
    %c0_10 = arith.constant 0 : index
    %c0_11 = arith.constant 0 : index
    %9 = vector.load %arg3[%c0_10, %c0_11] : memref<2x1xi32, #tpu.memory_space<vmem>>, vector<2x1xi32>
    %10 = vector.shape_cast %9 : vector<2x1xi32> to vector<2x1x1xi32>
    %c8_i32 = arith.constant 8 : i32
    %11 = arith.muli %arg1, %c8_i32 : i32
    %12 = tpu.iota {dimensions = array<i32: 1>} : vector<1x8x1xi32>
    %13 = vector.broadcast %11 : i32 to vector<1x8x1xi32>
    %14 = arith.addi %13, %12 : vector<1x8x1xi32>
    %15 = tpu.iota {dimensions = array<i32: 2>} : vector<1x1x128xi32>
    %16 = vector.broadcast %14 : vector<1x8x1xi32> to vector<2x8x1xi32>
    %17 = vector.broadcast %8 : vector<2x1x1xi32> to vector<2x8x1xi32>
    %18 = arith.cmpi slt, %16, %17 : vector<2x8x1xi32>
    %19 = vector.broadcast %15 : vector<1x1x128xi32> to vector<2x1x128xi32>
    %20 = vector.broadcast %10 : vector<2x1x1xi32> to vector<2x1x128xi32>
    %21 = arith.cmpi slt, %19, %20 : vector<2x1x128xi32>
    %22 = vector.broadcast %18 : vector<2x8x1xi1> to vector<2x8x128xi1>
    %23 = vector.broadcast %21 : vector<2x1x128xi1> to vector<2x8x128xi1>
    %24 = arith.andi %22, %23 : vector<2x8x128xi1>
    %cst_12 = arith.constant -1.000000e+09 : f32
    %25 = vector.broadcast %cst_12 : f32 to vector<2x8x128xf32>
    %26 = arith.select %24, %6, %25 : vector<2x8x128xi1>, vector<2x8x128xf32>
    %c0_13 = arith.constant 0 : index
    %c0_14 = arith.constant 0 : index
    %c0_15 = arith.constant 0 : index
    %27 = vector.load %arg10[%c0_13, %c0_14, %c0_15] : memref<2x8x128xf32, #tpu.memory_space<vmem>>, vector<2x8x128xf32>
    tpu.vector_store %arg10[%c0_13, %c0_14, %c0_15], %26 {strides = array<i32>} : memref<2x8x128xf32, #tpu.memory_space<vmem>>, vector<2x8x128xf32>,
    %cst_16 = arith.constant dense<0xFF800000> : vector<2x8xf32>
    %28 = vector.multi_reduction <maximumf>, %26, %cst_16 [2] : vector<2x8x128xf32> to vector<2x8xf32>
    %29 = vector.shape_cast %28 : vector<2x8xf32> to vector<2x8x1xf32>
    %30 = vector.broadcast %29 : vector<2x8x1xf32> to vector<2x8x128xf32>
    %31 = arith.subf %26, %30 : vector<2x8x128xf32>
    %32 = math.exp %31 : vector<2x8x128xf32>
    %c8_i32_17 = arith.constant 8 : i32
    %33 = vector.broadcast %c8_i32_17 : i32 to vector<1x1x128xi32>
    %34 = arith.cmpi slt, %15, %33 : vector<1x1x128xi32>
    %cst_18 = arith.constant 0.000000e+00 : f32
    %35 = vector.shape_cast %34 : vector<1x1x128xi1> to vector<1x1x128xi1>
    %36 = vector.broadcast %35 : vector<1x1x128xi1> to vector<2x8x128xi1>
    %37 = vector.broadcast %cst_18 : f32 to vector<2x8x128xf32>
    %38 = arith.select %36, %32, %37 : vector<2x8x128xi1>, vector<2x8x128xf32>
    %cst_19 = arith.constant dense<0.000000e+00> : vector<2x8xf32>
    %39 = vector.multi_reduction <add>, %38, %cst_19 [2] : vector<2x8x128xf32> to vector<2x8xf32>
    %40 = vector.shape_cast %39 : vector<2x8xf32> to vector<2x8x1xf32>
    %41 = vector.broadcast %40 : vector<2x8x1xf32> to vector<2x8x128xf32>
    %42 = arith.divf %38, %41 : vector<2x8x128xf32>
    %cst_20 = arith.constant dense<0.000000e+00> : vector<2x8x128xf32>
    %43 = tpu.matmul %42, %1, %cst_20 {dimension_numbers = #tpu.dot_dimension_numbers<[2], [1], [1], [2], [0, 0, 0, 1, 1, 2], [0], [0]>} : vector<2x8x128xf32>, vector<2x128x128xf32>, vector<2x8x128xf32> -> vector<2x8x128xf32>
    %44 = vector.shape_cast %43 : vector<2x8x128xf32> to vector<16x128xf32>
    %c0_21 = arith.constant 0 : index
    %c0_22 = arith.constant 0 : index
    %45 = vector.load %arg7[%c0_21, %c0_22] : memref<128x128xf32, #tpu.memory_space<vmem>>, vector<128x128xf32>
    %cst_23 = arith.constant dense<0.000000e+00> : vector<16x128xf32>
    %46 = tpu.matmul %44, %45, %cst_23 {dimension_numbers = #tpu.dot_dimension_numbers<[1], [0], [0], [1], [0, 0, 1, 1], [], []>} : vector<16x128xf32>, vector<128x128xf32>, vector<16x128xf32> -> vector<16x128xf32>
    %c0_24 = arith.constant 0 : index
    %c0_25 = arith.constant 0 : index
    %47 = vector.load %arg8[%c0_24, %c0_25] : memref<128x128xf32, #tpu.memory_space<vmem>>, vector<128x128xf32>
    %cst_26 = arith.constant dense<0.000000e+00> : vector<16x128xf32>
    %48 = tpu.matmul %4, %47, %cst_26 {dimension_numbers = #tpu.dot_dimension_numbers<[1], [0], [0], [1], [0, 0, 1, 1], [], []>} : vector<16x128xf32>, vector<128x128xf32>, vector<16x128xf32> -> vector<16x128xf32>
    %49 = arith.addf %46, %48 : vector<16x128xf32>
    %50 = math.tanh %49 : vector<16x128xf32>
    %51 = vector.shape_cast %50 : vector<16x128xf32> to vector<2x8x128xf32>
    %c0_27 = arith.constant 0 : index
    %c0_28 = arith.constant 0 : index
    %c0_29 = arith.constant 0 : index
    %52 = vector.load %arg9[%c0_27, %c0_28, %c0_29] : memref<2x8x128xf32, #tpu.memory_space<vmem>>, vector<2x8x128xf32>
    tpu.vector_store %arg9[%c0_27, %c0_28, %c0_29], %51 {strides = array<i32>} : memref<2x8x128xf32, #tpu.memory_space<vmem>>, vector<2x8x128xf32>,
    return
  }
  func.func @transform_0(%arg0: i32, %arg1: i32) -> (i32, i32) {
    %c0_i32 = arith.constant 0 : i32
    %c0_i32_0 = arith.constant 0 : i32
    return %arg0, %c0_i32 : i32, i32
  }
  func.func @transform_1(%arg0: i32, %arg1: i32) -> (i32, i32) {
    %c0_i32 = arith.constant 0 : i32
    %c0_i32_0 = arith.constant 0 : i32
    return %arg0, %c0_i32 : i32, i32
  }
  func.func @transform_2(%arg0: i32, %arg1: i32) -> (i32, i32, i32) {
    %c0_i32 = arith.constant 0 : i32
    %c0_i32_0 = arith.constant 0 : i32
    return %arg0, %arg1, %c0_i32 : i32, i32, i32
  }
  func.func @transform_3(%arg0: i32, %arg1: i32) -> (i32, i32, i32) {
    %c0_i32 = arith.constant 0 : i32
    %c0_i32_0 = arith.constant 0 : i32
    %c0_i32_1 = arith.constant 0 : i32
    return %arg0, %c0_i32, %c0_i32_0 : i32, i32, i32
  }
  func.func @transform_4(%arg0: i32, %arg1: i32) -> (i32, i32) {
    %c0_i32 = arith.constant 0 : i32
    %c0_i32_0 = arith.constant 0 : i32
    %c0_i32_1 = arith.constant 0 : i32
    return %c0_i32, %c0_i32_0 : i32, i32
  }
  func.func @transform_5(%arg0: i32, %arg1: i32) -> (i32, i32) {
    %c0_i32 = arith.constant 0 : i32
    %c0_i32_0 = arith.constant 0 : i32
    %c0_i32_1 = arith.constant 0 : i32
    return %c0_i32, %c0_i32_0 : i32, i32
  }
  func.func @transform_6(%arg0: i32, %arg1: i32) -> (i32, i32) {
    %c0_i32 = arith.constant 0 : i32
    %c0_i32_0 = arith.constant 0 : i32
    %c0_i32_1 = arith.constant 0 : i32
    return %c0_i32, %c0_i32_0 : i32, i32
  }
  func.func @transform_7(%arg0: i32, %arg1: i32) -> (i32, i32, i32) {
    %c0_i32 = arith.constant 0 : i32
    %c0_i32_0 = arith.constant 0 : i32
    return %arg0, %arg1, %c0_i32 : i32, i32, i32
  }
  func.func @transform_8(%arg0: i32, %arg1: i32) -> (i32, i32, i32) {
    %c0_i32 = arith.constant 0 : i32
    %c0_i32_0 = arith.constant 0 : i32
    return %arg0, %arg1, %c0_i32 : i32, i32, i32
  }
}

</mosaic_0001>

<bundles_post_ra>
// kernel: tpu_custom_call.1
= control target key start
LH: loop header
LB: loop body
LE: loop exit
PB: predicated region body
PF: predicated region fallthrough
CT: control target
= control target key end

     0   :  { %14 = vsyncpa [#allocation3], 0  ;;  %s817_s0 = inlined_call_operand.vmem [shape: s32[2,1], index: 0, kind: input, shape index: {}]   ;;  %s818_s1 = inlined_call_operand.vmem [shape: s32[2,1], index: 1, kind: input, shape index: {}]   ;;  %s819_s2 = inlined_call_operand.hbm [shape: f32[2,8,128], index: 2, kind: input, shape index: {}]   ;;  %s820_s3 = inlined_call_operand.hbm [shape: f32[2,128,128], index: 3, kind: input, shape index: {}]   ;;  %s821_s4 = inlined_call_operand.hbm [shape: f32[128,128], index: 4, kind: input, shape index: {}]   ;;  %s822_s5 = inlined_call_operand.hbm [shape: f32[128,128], index: 5, kind: input, shape index: {}]   ;;  %s823_s6 = inlined_call_operand.hbm [shape: f32[128,128], index: 6, kind: input, shape index: {}]   ;;  %s824_s7 = inlined_call_operand.hbm [shape: f32[2,8,128], index: 7, kind: output, shape index: {0}]   ;;  %s825_s8 = inlined_call_operand.hbm [shape: f32[2,8,128], index: 8, kind: output, shape index: {1}]  }
   0x1   :  { %15 = vsyncpa [#allocation6], 0 }
   0x2   :  { %16 = vsyncpa [#allocation9], 0 }
   0x3   :  { %17 = vsyncpa [#allocation4], 0 }
   0x4   :  { %18 = vsyncpa [#allocation13], 0  ;;  %s40_s29 = sshll.u32 %s820_s3, 4  ;;  %s678_s30 = smov [#allocation5]   ;;  %s41_s29 = int_to_ptr.hbm [resolvable:$true] %s40_s29 }
   0x5   :  { %s42_s9 = sshll.u32 %s678_s30, 4  ;;  %s66_s12 = sshll.u32 %s822_s5, 4  ;;  %s43_s9 = int_to_ptr.vmem [resolvable:$true] %s42_s9  ;;  %s67_s12 = int_to_ptr.hbm [resolvable:$true] %s66_s12 }
   0x6   :  { %s679_s13 = smov 128   ;;  %s680_s14 = smov 8  }
   0x7   :  { %48 = dma.hbm_to_vmem [thread:$0]  %s41_s29, 4096, %s43_s9, [#allocation6], %s679_s13, %s679_s13, %s680_s14  }
   0x8   :  { %s681_s15 = smov [#allocation8]   ;;  %s27_s3 = sshll.u32 %s819_s2, 4  ;;  %s28_s3 = int_to_ptr.hbm [resolvable:$true] %s27_s3 }
   0x9   :  { %s68_s16 = sshll.u32 %s681_s15, 4  ;;  %s53_s20 = sshll.u32 %s821_s4, 4  ;;  %s69_s16 = int_to_ptr.vmem [resolvable:$true] %s68_s16  ;;  %s54_s20 = int_to_ptr.hbm [resolvable:$true] %s53_s20 }
   0xa   :  { %74 = dma.hbm_to_vmem [thread:$0]  %s67_s12, 2048, %s69_s16, [#allocation9], %s679_s13, %s679_s13, %s680_s14  }
   0xb   :  { %s682_s21 = smov [#allocation2]   ;;  %s683_s23 = smov [#allocation7]  }
   0xc   :  { %s29_s22 = sshll.u32 %s682_s21, 4  ;;  %s55_s2 = sshll.u32 %s683_s23, 4  ;;  %s30_s22 = int_to_ptr.vmem [resolvable:$true] %s29_s22  ;;  %s56_s2 = int_to_ptr.vmem [resolvable:$true] %s55_s2 }
   0xd   :  { %35 = dma.hbm_to_vmem [thread:$0]  %s28_s3, 256, %s30_s22, [#allocation3], %s679_s13, %s679_s13, %s680_s14  }
   0xe   :  { %s79_s26 = sshll.u32 %s823_s6, 4  ;;  %s684_s4 = smov [#allocation10]   ;;  %s80_s26 = int_to_ptr.hbm [resolvable:$true] %s79_s26 }
   0xf   :  { %61 = dma.hbm_to_vmem [thread:$0]  %s54_s20, 2048, %s56_s2, [#allocation6], %s679_s13, %s679_s13, %s680_s14  }
  0x10   :  { %s81_s27 = sshll.u32 %s684_s4, 4  ;;  %s82_s27 = int_to_ptr.vmem [resolvable:$true] %s81_s27 }
  0x11   :  { %87 = dma.hbm_to_vmem [thread:$0]  %s80_s26, 2048, %s82_s27, [#allocation9], %s679_s13, %s679_s13, %s680_s14  }
  0x12   :  { %668 = dma.done.wait [#allocation3], 256  }
  0x13   :  { %669 = vsyncadd [#allocation3], 4294967040 }
  0x14   :  { %670 = dma.done.wait [#allocation6], 6144  }
  0x15   :  { %671 = vsyncadd [#allocation6], 4294961152 }
  0x16   :  { %672 = dma.done.wait [#allocation9], 4096  }
  0x17   :  { %673 = vsyncadd [#allocation9], 4294963200  ;;  %v157_v0 = vld [vmem:[#allocation7 + $0x78] sm:$0xff]  ;;  %v156_v1 = vld [vmem:[#allocation7 + $0x70] sm:$0xff]  ;;  %v685_v45 = vmov 0   ;;  %v226_v50 = vlaneseq  ;;  %s456_s11 = sshll.u32 %s825_s8, 4  ;;  %s457_s11 = int_to_ptr.hbm [resolvable:$true] %s456_s11 }
  0x18   :  { %158 = vmatpush.msra.mxu1 %v157_v0  ;;  %v155_v2 = vld [vmem:[#allocation7 + $0x68] sm:$0xff]  ;;  %v154_v3 = vld [vmem:[#allocation7 + $0x60] sm:$0xff]  ;;  %v153_v4 = vld [vmem:[#allocation7 + $0x58] sm:$0xff]  ;;  %486 = vset.pattern.permute.xlu0 %v685_v45  ;;  %s687_s12 = smov [#allocation11]   ;;  %s443_s17 = sshll.u32 %s824_s7, 4  ;;  %s444_s17 = int_to_ptr.hbm [resolvable:$true] %s443_s17 }
  0x19   :  { %v152_v5 = vld [vmem:[#allocation7 + $0x50] sm:$0xff]  ;;  %v125_v6 = vld [vmem:[#allocation5 + $0x78] sm:$0xff]  ;;  %v151_v8 = vld [vmem:[#allocation7 + $0x48] sm:$0xff]  ;;  %487 = vset.pattern.permute.xlu1 %v685_v45  ;;  %v227_v52 = vshrl.u32 %v226_v50, 7  ;;  %s441_s15 = sshll.u32 %s687_s12, 4  ;;  %s442_s15 = int_to_ptr.vmem [resolvable:$true] %s441_s15 }
  0x1a   :  { %159 = vmatpush.msra.mxu1 %v156_v1  ;;  %v141_v7 = vld [vmem:[#allocation5 + $0xf8] sm:$0xff]  ;;  %315 = vmatpush.msra.mxu3 %v125_v6  ;;  %v124_v9 = vld [vmem:[#allocation5 + $0x70] sm:$0xff]  ;;  %v150_v10 = vld [vmem:[#allocation7 + $0x40] sm:$0xff]  ;;  %v231_v1 = vand.u32 127, %v226_v50 }
  0x1b   :  { %201 = vmatpush.xpose.msra.mxu2 %v141_v7  ;;  %335 = vmatpush.msra.mxu0 %v141_v7  ;;  %v123_v11 = vld [vmem:[#allocation5 + $0x68] sm:$0xff]  ;;  %v140_v12 = vld [vmem:[#allocation5 + $0xf0] sm:$0xff]  ;;  %v149_v13 = vld [vmem:[#allocation7 + $0x38] sm:$0xff] }
  0x1c   :  { %160 = vmatpush.msra.mxu1 %v155_v2  ;;  %316 = vmatpush.msra.mxu3 %v124_v9  ;;  %v763_v14 = vld [vmem:[#allocation5 + $0x60] sm:$0xff]  ;;  %v148_v15 = vld [vmem:[#allocation7 + $0x30] sm:$0xff]  ;;  %v766_v16 = vld [vmem:[#allocation5 + $0x58] sm:$0xff]  ;;  %vm276_vm8 = vcmp.lt.s32.totalorder %v231_v1, 8 }
  0x1d   :  { %336 = vmatpush.msra.mxu0 %v140_v12  ;;  %v139_v17 = vld [vmem:[#allocation5 + $0xe8] sm:$0xff]  ;;  %v769_v19 = vld [vmem:[#allocation5 + $0x50] sm:$0xff]  ;;  %v146_v20 = vld [vmem:[#allocation7 + $0x20] sm:$0xff] }
  0x1e   :  { %161 = vmatpush.msra.mxu1 %v154_v3  ;;  %317 = vmatpush.msra.mxu3 %v123_v11  ;;  %v147_v18 = vld [vmem:[#allocation7 + $0x28] sm:$0xff]  ;;  %v138_v21 = vld [vmem:[#allocation5 + $0xe0] sm:$0xff]  ;;  %v145_v23 = vld [vmem:[#allocation7 + $0x18] sm:$0xff] }
  0x1f   :  { %202 = vmatpush.xpose.msra.mxu2 %v140_v12  ;;  %337 = vmatpush.msra.mxu0 %v139_v17  ;;  %v772_v22 = vld [vmem:[#allocation5 + $0x48] sm:$0xff]  ;;  %v144_v24 = vld [vmem:[#allocation7 + $0x10] sm:$0xff]  ;;  %v137_v25 = vld [vmem:[#allocation5 + $0xd8] sm:$0xff] }
  0x20   :  { %162 = vmatpush.msra.mxu1 %v153_v4  ;;  %318 = vmatpush.msra.mxu3 %v763_v14  ;;  %v775_v26 = vld [vmem:[#allocation5 + $0x40] sm:$0xff]  ;;  %v143_v27 = vld [vmem:[#allocation7 + $0x8] sm:$0xff]  ;;  %v108_v29 = vld [vmem:[#allocation2] sm:$0xff] }
  0x21   :  { %338 = vmatpush.msra.mxu0 %v138_v21  ;;  %v142_v28 = vld [vmem:[#allocation7] sm:$0xff]  ;;  %v136_v30 = vld [vmem:[#allocation5 + $0xd0] sm:$0xff]  ;;  %v117_v31 = vld [vmem:[#allocation5 + $0x38] sm:$0xff] }
  0x22   :  { %163 = vmatpush.msra.mxu1 %v152_v5  ;;  %319 = vmatpush.msra.mxu3 %v766_v16  ;;  %v135_v32 = vld [vmem:[#allocation5 + $0xc8] sm:$0xff]  ;;  %v116_v33 = vld [vmem:[#allocation5 + $0x30] sm:$0xff]  ;;  %v109_v34 = vld [vmem:[#allocation2 + $0x8] sm:$0xff] }
  0x23   :  { %203 = vmatpush.xpose.msra.mxu2 %v139_v17  ;;  %339 = vmatpush.msra.mxu0 %v137_v25  ;;  %v134_v35 = vld [vmem:[#allocation5 + $0xc0] sm:$0xff]  ;;  %v115_v36 = vld [vmem:[#allocation5 + $0x28] sm:$0xff]  ;;  %v133_v37 = vld [vmem:[#allocation5 + $0xb8] sm:$0xff] }
  0x24   :  { %164 = vmatpush.msra.mxu1 %v151_v8  ;;  %320 = vmatpush.msra.mxu3 %v769_v19  ;;  %v114_v38 = vld [vmem:[#allocation5 + $0x20] sm:$0xff]  ;;  %v132_v39 = vld [vmem:[#allocation5 + $0xb0] sm:$0xff]  ;;  %v113_v40 = vld [vmem:[#allocation5 + $0x18] sm:$0xff] }
  0x25   :  { %340 = vmatpush.msra.mxu0 %v136_v30  ;;  %v131_v41 = vld [vmem:[#allocation5 + $0xa8] sm:$0xff]  ;;  %v112_v42 = vld [vmem:[#allocation5 + $0x10] sm:$0xff]  ;;  %v130_v43 = vld [vmem:[#allocation5 + $0xa0] sm:$0xff] }
  0x26   :  { %165 = vmatpush.msra.mxu1 %v150_v10  ;;  %321 = vmatpush.msra.mxu3 %v772_v22  ;;  %v223_v44 = vld [vmem:[%s818_s1] sm:$0x3]  ;;  %v111_v46 = vld [vmem:[#allocation5 + $0x8] sm:$0xff]  ;;  %v129_v47 = vld [vmem:[#allocation5 + $0x98] sm:$0xff] }
  0x27   :  { %204 = vmatpush.xpose.msra.mxu2 %v138_v21  ;;  %341 = vmatpush.msra.mxu0 %v135_v32  ;;  %v110_v48 = vld [vmem:[#allocation5] sm:$0xff]  ;;  %v128_v49 = vld [vmem:[#allocation5 + $0x90] sm:$0xff]  ;;  %v127_v55 = vld [vmem:[#allocation5 + $0x88] sm:$0xff]  ;;  %v224_v56 = vrot.slane %v223_v44, 1 }
  0x28   :  { %166 = vmatpush.msra.mxu1 %v149_v13  ;;  %322 = vmatpush.msra.mxu3 %v775_v26  ;;  %v221_v51 = vld [vmem:[%s817_s0] sm:$0x3]  ;;  %v126_v57 = vld [vmem:[#allocation5 + $0x80] sm:$0xff]  ;;  %v386_v10 = vld [vmem:[#allocation10 + $0x78] sm:$0xff]  ;;  %s686_s0 = smov [#allocation12]  }
  0x29   :  { %342 = vmatpush.msra.mxu0 %v134_v35  ;;  %237 = vperm.xlu0 %486, %v223_v44   ;;  %v232_v53 = vperm.slane %v221_v51, 0  ;;  %v222_v58 = vrot.slane %v221_v51, 1  ;;  %v366_v44 = vld [vmem:[#allocation8 + $0x58] sm:$0xff]  ;;  %v364_v51 = vld [vmem:[#allocation8 + $0x48] sm:$0xff]  ;;  %s454_s30 = sshll.u32 %s686_s0, 4  ;;  %s455_s30 = int_to_ptr.vmem [resolvable:$true] %s454_s30 }
  0x2a   :  { %167 = vmatpush.msra.mxu1 %v148_v15  ;;  %323 = vmatpush.msra.mxu3 %v117_v31 }
  0x2b   :  { %205 = vmatpush.xpose.msra.mxu2 %v137_v25  ;;  %343 = vmatpush.msra.mxu0 %v133_v37  ;;  %vm234_vm0 = vcmp.lt.s32.totalorder %v227_v52, %v232_v53  ;;  %v233_v59 = vperm.slane %v222_v58, 0  ;;  %v381_v25 = vld [vmem:[#allocation10 + $0x50] sm:$0xff] }
  0x2c   :  { %168 = vmatpush.msra.mxu1 %v147_v18  ;;  %324 = vmatpush.msra.mxu3 %v116_v33  ;;  %v246_v54 = vsel %vm234_vm0, 1, %v685_v45  ;;  %v361_v58 = vld [vmem:[#allocation8 + $0x30] sm:$0xff] }
  0x2d   :  { %344 = vmatpush.msra.mxu0 %v132_v39  ;;  %241 = vperm.xlu1 %487, %v224_v56   ;;  %vm235_vm1 = vcmp.lt.s32.totalorder %v227_v52, %v233_v59 }
  0x2e   :  { %169 = vmatpush.msra.mxu1 %v146_v20  ;;  %325 = vmatpush.msra.mxu3 %v115_v36  ;;  %v247_v60 = vsel %vm235_vm1, 1, %v685_v45 }
  0x2f   :  { %206 = vmatpush.xpose.msra.mxu2 %v136_v30  ;;  %345 = vmatpush.msra.mxu0 %v131_v41  ;;  %v376_v30 = vld [vmem:[#allocation10 + $0x28] sm:$0xff] }
  0x30   :  { %170 = vmatpush.msra.mxu1 %v145_v23  ;;  %326 = vmatpush.msra.mxu3 %v114_v38  ;;  %v383_v23 = vld [vmem:[#allocation10 + $0x60] sm:$0xff] }
  0x31   :  { %346 = vmatpush.msra.mxu0 %v130_v43  ;;  %249 = vperm.xlu0 %486, %v246_v54   ;;  %v363_v54 = vld [vmem:[#allocation8 + $0x40] sm:$0xff] }
  0x32   :  { %171 = vmatpush.msra.mxu1 %v144_v24  ;;  %327 = vmatpush.msra.mxu3 %v113_v40  ;;  %v382_v24 = vld [vmem:[#allocation10 + $0x58] sm:$0xff] }
  0x33   :  { %207 = vmatpush.xpose.msra.mxu2 %v135_v32  ;;  %347 = vmatpush.msra.mxu0 %v129_v47  ;;  %v374_v32 = vld [vmem:[#allocation10 + $0x18] sm:$0xff] }
  0x34   :  { %172 = vmatpush.msra.mxu1 %v143_v27  ;;  %328 = vmatpush.msra.mxu3 %v112_v42  ;;  %v379_v27 = vld [vmem:[#allocation10 + $0x40] sm:$0xff] }
  0x35   :  { %348 = vmatpush.msra.mxu0 %v128_v49  ;;  %252 = vperm.xlu1 %487, %v247_v60  }
  0x36   :  { %173 = vmatpush.msra.mxu1 %v142_v28  ;;  %329 = vmatpush.msra.mxu3 %v111_v46  ;;  %v378_v28 = vld [vmem:[#allocation10 + $0x38] sm:$0xff] }
  0x37   :  { %174 = vmatmul.f32.vlgmr.msra.gmra.mxu1 %v108_v29  ;;  %208 = vmatpush.xpose.msra.mxu2 %v134_v35  ;;  %v377_v29 = vld [vmem:[#allocation10 + $0x30] sm:$0xff]  ;;  %v371_v35 = vld [vmem:[#allocation10] sm:$0xff] }
  0x38   :  { %181 = vmatpush.xpose.msrb.mxu1 %v125_v6  ;;  %330 = vmatpush.msra.mxu3 %v110_v48 }
  0x39   :  { %349 = vmatpush.msra.mxu0 %v127_v55 }
  0x3a   :  { %387 = vmatpush.msrb.mxu3 %v386_v10  ;;  %v356_v10 = vld [vmem:[#allocation8 + $0x8] sm:$0xff] }
  0x3b   :  { %209 = vmatpush.xpose.msra.mxu2 %v133_v37  ;;  %350 = vmatpush.msra.mxu0 %v126_v57  ;;  %v370_v37 = vld [vmem:[#allocation8 + $0x78] sm:$0xff] }
  0x3c   :  { %182 = vmatpush.xpose.msrb.mxu1 %v124_v9 }
  0x3d   :  { %410 = vmatpush.msrb.mxu0 %v370_v37 }
  0x3f   :  { %177 = vmatmul.f32.gmra.mxu1 %v109_v34  ;;  %210 = vmatpush.xpose.msra.mxu2 %v132_v39  ;;  %v372_v34 = vld [vmem:[#allocation10 + $0x8] sm:$0xff] }
  0x40   :  { %183 = vmatpush.xpose.msrb.mxu1 %v123_v11  ;;  %v385_v11 = vld [vmem:[#allocation10 + $0x70] sm:$0xff]  ;;  %v368_v39 = vld [vmem:[#allocation8 + $0x68] sm:$0xff] }
  0x41   :  { %388 = vmatpush.msrb.mxu3 %v385_v11 }
  0x43   :  { %211 = vmatpush.xpose.msra.mxu2 %v131_v41 }
  0x44   :  { %184 = vmatpush.xpose.msrb.mxu1 %v763_v14 }
  0x47   :  { %212 = vmatpush.xpose.msra.mxu2 %v130_v43 }
  0x48   :  { %185 = vmatpush.xpose.msrb.mxu1 %v766_v16 }
  0x4b   :  { %213 = vmatpush.xpose.msra.mxu2 %v129_v47 }
  0x4c   :  { %186 = vmatpush.xpose.msrb.mxu1 %v769_v19 }
  0x4f   :  { %214 = vmatpush.xpose.msra.mxu2 %v128_v49 }
  0x50   :  { %187 = vmatpush.xpose.msrb.mxu1 %v772_v22  ;;  %v384_v22 = vld [vmem:[#allocation10 + $0x68] sm:$0xff] }
  0x51   :  { %389 = vmatpush.msrb.mxu3 %v384_v22 }
  0x53   :  { %215 = vmatpush.xpose.msra.mxu2 %v127_v55  ;;  %390 = vmatpush.msrb.mxu3 %v383_v23 }
  0x54   :  { %188 = vmatpush.xpose.msrb.mxu1 %v775_v26  ;;  %v380_v26 = vld [vmem:[#allocation10 + $0x48] sm:$0xff] }
  0x55   :  { %391 = vmatpush.msrb.mxu3 %v382_v24 }
  0x57   :  { %216 = vmatpush.xpose.msra.mxu2 %v126_v57  ;;  %392 = vmatpush.msrb.mxu3 %v381_v25  ;;  %v362_v57 = vld [vmem:[#allocation8 + $0x38] sm:$0xff] }
  0x58   :  { %189 = vmatpush.xpose.msrb.mxu1 %v117_v31  ;;  %v375_v31 = vld [vmem:[#allocation10 + $0x20] sm:$0xff] }
  0x59   :  { %393 = vmatpush.msrb.mxu3 %v380_v26 }
  0x5b   :  { %394 = vmatpush.msrb.mxu3 %v379_v27 }
  0x5c   :  { %190 = vmatpush.xpose.msrb.mxu1 %v116_v33  ;;  %v373_v33 = vld [vmem:[#allocation10 + $0x10] sm:$0xff] }
  0x5d   :  { %395 = vmatpush.msrb.mxu3 %v378_v28 }
  0x5f   :  { %396 = vmatpush.msrb.mxu3 %v377_v29 }
  0x60   :  { %191 = vmatpush.xpose.msrb.mxu1 %v115_v36 }
  0x61   :  { %397 = vmatpush.msrb.mxu3 %v376_v30 }
  0x63   :  { %398 = vmatpush.msrb.mxu3 %v375_v31 }
  0x64   :  { %192 = vmatpush.xpose.msrb.mxu1 %v114_v38  ;;  %v369_v38 = vld [vmem:[#allocation8 + $0x70] sm:$0xff] }
  0x65   :  { %399 = vmatpush.msrb.mxu3 %v374_v32  ;;  %411 = vmatpush.msrb.mxu0 %v369_v38 }
  0x67   :  { %400 = vmatpush.msrb.mxu3 %v373_v33  ;;  %412 = vmatpush.msrb.mxu0 %v368_v39 }
  0x68   :  { %193 = vmatpush.xpose.msrb.mxu1 %v113_v40 }
  0x69   :  { %401 = vmatpush.msrb.mxu3 %v372_v34 }
  0x6b   :  { %402 = vmatpush.msrb.mxu3 %v371_v35 }
  0x6c   :  { %194 = vmatpush.xpose.msrb.mxu1 %v112_v42  ;;  %v367_v42 = vld [vmem:[#allocation8 + $0x60] sm:$0xff] }
  0x6d   :  { %413 = vmatpush.msrb.mxu0 %v367_v42 }
  0x6f   :  { %414 = vmatpush.msrb.mxu0 %v366_v44 }
  0x70   :  { %195 = vmatpush.xpose.msrb.mxu1 %v111_v46 }
  0x74   :  { %196 = vmatpush.xpose.msrb.mxu1 %v110_v48  ;;  %v365_v48 = vld [vmem:[#allocation8 + $0x50] sm:$0xff] }
  0x75   :  { %415 = vmatpush.msrb.mxu0 %v365_v48 }
  0x77   :  { %416 = vmatpush.msrb.mxu0 %v364_v51 }
  0x79   :  { %417 = vmatpush.msrb.mxu0 %v363_v54 }
  0x7b   :  { %418 = vmatpush.msrb.mxu0 %v362_v57 }
  0x7d   :  { %419 = vmatpush.msrb.mxu0 %v361_v58 }
  0x9b   :  { %v238_v63 = vpop.permute.xlu0 %237 }
  0x9c   :  { %v239_v0 = vperm.slane %v238_v63, 0  ;;  %v360_v63 = vld [vmem:[#allocation8 + $0x28] sm:$0xff] }
  0x9d   :  { %420 = vmatpush.msrb.mxu0 %v360_v63 }
  0x9e   :  { %vm244_vm3 = vcmp.lt.s32.totalorder %v231_v1, %v239_v0 }
  0x9f   :  { %v242_v3 = vpop.permute.xlu1 %241 }
  0xa0   :  { %v243_v6 = vperm.slane %v242_v3, 0 }
  0xa2   :  { %vm245_vm6 = vcmp.lt.s32.totalorder %v231_v1, %v243_v6  ;;  %v359_v1 = vld [vmem:[#allocation8 + $0x20] sm:$0xff] }
  0xa3   :  { %v250_v2 = vpop.permute.xlu0 %249  ;;  %421 = vmatpush.msrb.mxu0 %v359_v1 }
  0xa4   :  { %vm254_vm2 = vcmp.eq.s32.totalorder %v250_v2, 1 }
  0xa5   :  { %vm260_vm4 = vmand %vm254_vm2, %vm244_vm3 }
  0xa7   :  { %v253_v7 = vpop.permute.xlu1 %252 }
  0xa8   :  { %vm255_vm5 = vcmp.eq.s32.totalorder %v253_v7, 1  ;;  %v357_v7 = vld [vmem:[#allocation8 + $0x10] sm:$0xff] }
  0xa9   :  { %vm261_vm7 = vmand %vm255_vm5, %vm245_vm6 }
  0xb4   :  { %v789_v61 = vpop.f32.mrf.mxu1 }
  0xb5   :  { %197 = vmatmul.f32.vlgmr.msrb.gmra.mxu1 %v789_v61 }
  0xbc   :  { %v792_v62 = vpop.f32.mrf.mxu1 }
  0xbd   :  { %217 = vmatmul.f32.vlgmr.msra.gmra.mxu2 %v792_v62 }
 0x132   :  { %v198_v4 = vpop.f32.mrf.mxu1 }
 0x133   :  { %v262_v5 = vsel %vm260_vm4, %v198_v4, -1e+09 }
 0x134   :  { %264 = vst [vmem:[#allocation12] sm:$0xff] %v262_v5  ;;  %266 = vmax.xlane.f32.xlu2 %v262_v5 }
 0x140   :  { %v218_v8 = vpop.f32.mrf.mxu2 }
 0x141   :  { %v263_v9 = vsel %vm261_vm7, %v218_v8, -1e+09 }
 0x142   :  { %265 = vst [vmem:[#allocation12 + $0x8] sm:$0xff] %v263_v9  ;;  %268 = vmax.xlane.f32.xlu2 %v263_v9 }
 0x143   :  { %462 = dma.vmem_to_hbm [thread:$0]  %s455_s30, 256, %s457_s11, [#allocation13], %s679_s13, %s679_s13, %s680_s14  }
 0x1a7   :  { %v267_v12 = vpop.xlane.xlu2 %266 }
 0x1a8   :  { %v270_v13 = vsub.f32 %v262_v5, %v267_v12  ;;  %v358_v5 = vld [vmem:[#allocation8 + $0x18] sm:$0xff] }
 0x1a9   :  { %422 = vmatpush.msrb.mxu0 %v358_v5 }
 0x1aa   :  { %v272_v14 = vmul.f32 1.442695, %v270_v13  ;;  %v355_v13 = vld [vmem:[#allocation8] sm:$0xff] }
 0x1ab   :  { %423 = vmatpush.msrb.mxu0 %v357_v7 }
 0x1ac   :  { %488 = vpow2.f32 %v272_v14 }
 0x1ad   :  { %424 = vmatpush.msrb.mxu0 %v356_v10 }
 0x1af   :  { %425 = vmatpush.msrb.mxu0 %v355_v13 }
 0x1b2   :  { %v489_v15 = vpop.eup %488 }
 0x1b3   :  { %v795_v16 = vsel %vm276_vm8, %v489_v15, 0.0 }
 0x1b4   :  { %281 = vadd.xlane.f32.xlu0 %v795_v16 }
 0x1b5   :  { %v269_v17 = vpop.xlane.xlu2 %268 }
 0x1b6   :  { %v271_v18 = vsub.f32 %v263_v9, %v269_v17 }
 0x1b8   :  { %v274_v19 = vmul.f32 1.442695, %v271_v18 }
 0x1ba   :  { %490 = vpow2.f32 %v274_v19 }
 0x1c0   :  { %v491_v20 = vpop.eup %490 }
 0x1c1   :  { %v798_v21 = vsel %vm276_vm8, %v491_v20, 0.0 }
 0x1c2   :  { %283 = vadd.xlane.f32.xlu1 %v798_v21 }
 0x227   :  { %v282_v36 = vpop.xlane.xlu0 %281 }
 0x228   :  { %492 = vrcp.f32 %v282_v36  ;;  %v296_v45 = vand.u32 2147483648, %v282_v36  ;;  %v294_v47 = vand.u32 2147483647, %v282_v36  ;;  %vm290_vm10 = vweird.f32 %v282_v36 }
 0x22a   :  { %v297_v52 = vor.u32 1.1754944e-38, %v296_v45  ;;  %vm295_vm12 = vcmp.eq.f32.partialorder %v294_v47, 8.507059e+37 }
 0x22e   :  { %v493_v40 = vpop.eup %492 }
 0x22f   :  { %v286_v41 = vmul.f32 %v493_v40, %v282_v36  ;;  %vm291_vm9 = vweird.f32 %v493_v40 }
 0x230   :  { %vm292_vm11 = vmor %vm290_vm10, %vm291_vm9 }
 0x231   :  { %v287_v43 = vsub.f32 1.0, %v286_v41 }
 0x233   :  { %v288_v46 = vmul.f32 %v493_v40, %v287_v43 }
 0x235   :  { %v284_v49 = vpop.xlane.xlu1 %283  ;;  %v289_v50 = vadd.f32 %v493_v40, %v288_v46 }
 0x236   :  { %494 = vrcp.f32 %v284_v49  ;;  %v311_v2 = vand.u32 2147483648, %v284_v49  ;;  %v309_v4 = vand.u32 2147483647, %v284_v49  ;;  %vm305_vm14 = vweird.f32 %v284_v49 }
 0x237   :  { %v293_v53 = vsel %vm292_vm11, %v493_v40, %v289_v50 }
 0x238   :  { %v298_v55 = vsel %vm295_vm12, %v297_v52, %v293_v53  ;;  %v312_v8 = vor.u32 1.1754944e-38, %v311_v2  ;;  %vm310_vm0 = vcmp.eq.f32.partialorder %v309_v4, 8.507059e+37 }
 0x239   :  { %v299_v56 = vmul.f32 %v298_v55, %v795_v16 }
 0x23b   :  { %331 = vmatmul.f32.vlgmr.msra.gmra.mxu3 %v299_v56 }
 0x23c   :  { %v495_v59 = vpop.eup %494 }
 0x23d   :  { %v301_v60 = vmul.f32 %v495_v59, %v284_v49  ;;  %vm306_vm13 = vweird.f32 %v495_v59 }
 0x23e   :  { %vm307_vm15 = vmor %vm305_vm14, %vm306_vm13 }
 0x23f   :  { %v302_v0 = vsub.f32 1.0, %v301_v60 }
 0x241   :  { %v303_v3 = vmul.f32 %v495_v59, %v302_v0 }
 0x243   :  { %403 = vmatmul.f32.vlgmr.msrb.gmra.mxu3 %v789_v61  ;;  %v304_v6 = vadd.f32 %v495_v59, %v303_v3 }
 0x245   :  { %v308_v9 = vsel %vm307_vm15, %v495_v59, %v304_v6 }
 0x246   :  { %v313_v11 = vsel %vm310_vm0, %v312_v8, %v308_v9 }
 0x247   :  { %v314_v12 = vmul.f32 %v313_v11, %v798_v21 }
 0x249   :  { %351 = vmatmul.f32.vlgmr.msra.gmra.mxu0 %v314_v12 }
 0x24b   :  { %406 = vmatmul.f32.gmra.mxu3 %v792_v62 }
 0x2be   :  { %v332_v14 = vpop.f32.mrf.mxu3 }
 0x2bf   :  { %426 = vmatmul.f32.vlgmr.msrb.gmra.mxu0 %v332_v14 }
 0x2c6   :  { %v352_v61 = vpop.f32.mrf.mxu0  ;;  %v404_v15 = vpop.f32.mrf.mxu3 }
 0x2c7   :  { %429 = vmatmul.f32.gmra.mxu0 %v352_v61 }
 0x2ce   :  { %v407_v17 = vpop.f32.mrf.mxu3 }
 0x33c   :  { %v427_v62 = vpop.f32.mrf.mxu0 }
 0x33d   :  { %v428_v16 = vadd.f32 %v427_v62, %v404_v15 }
 0x33f   :  { %496 = vtanh.f32 %v428_v16 }
 0x344   :  { %v430_v18 = vpop.f32.mrf.mxu0 }
 0x345   :  { %v497_v19 = vpop.eup %496  ;;  %v431_v20 = vadd.f32 %v430_v18, %v407_v17 }
 0x346   :  { %435 = vst [vmem:[#allocation11] sm:$0xff] %v497_v19 }
 0x347   :  { %498 = vtanh.f32 %v431_v20 }
 0x34d   :  { %v499_v21 = vpop.eup %498 }
 0x34e   :  { %436 = vst [vmem:[#allocation11 + $0x8] sm:$0xff] %v499_v21 }
 0x34f   :  { %449 = dma.vmem_to_hbm [thread:$0]  %s442_s15, 256, %s444_s17, [#allocation4], %s679_s13, %s679_s13, %s680_s14  }
 0x350   :  { %674 = dma.done.wait [#allocation4], 256  }
 0x351   :  { %675 = vsyncadd [#allocation4], 4294967040 }
 0x352   :  { %676 = dma.done.wait [#allocation13], 256  }
 0x353   :  { %677 = vsyncadd [#allocation13], 4294967040 }
 0x354   :  { %471 = vsyncpa [#allocation3], 1 }
 0x355   :  { %472 = vsyncpa [#allocation6], 1 }
 0x356   :  { %473 = vsyncpa [#allocation9], 1 }
 0x357   :  { %474 = vsyncpa [#allocation4], 1 }
 0x358   :  { %475 = vsyncpa [#allocation13], 1 }

// kernel: tpu_custom_call.1
= control target key start
LH: loop header
LB: loop body
LE: loop exit
PB: predicated region body
PF: predicated region fallthrough
CT: control target
= control target key end

     0   :  { %14 = vsyncpa [#allocation3], 0  ;;  %s817_s0 = inlined_call_operand.vmem [shape: s32[2,1], index: 0, kind: input, shape index: {}]   ;;  %s818_s1 = inlined_call_operand.vmem [shape: s32[2,1], index: 1, kind: input, shape index: {}]   ;;  %s819_s2 = inlined_call_operand.hbm [shape: f32[2,8,128], index: 2, kind: input, shape index: {}]   ;;  %s820_s3 = inlined_call_operand.hbm [shape: f32[2,128,128], index: 3, kind: input, shape index: {}]   ;;  %s821_s4 = inlined_call_operand.hbm [shape: f32[128,128], index: 4, kind: input, shape index: {}]   ;;  %s822_s5 = inlined_call_operand.hbm [shape: f32[128,128], index: 5, kind: input, shape index: {}]   ;;  %s823_s6 = inlined_call_operand.hbm [shape: f32[128,128], index: 6, kind: input, shape index: {}]   ;;  %s824_s7 = inlined_call_operand.hbm [shape: f32[2,8,128], index: 7, kind: output, shape index: {0}]   ;;  %s825_s8 = inlined_call_operand.hbm [shape: f32[2,8,128], index: 8, kind: output, shape index: {1}]  }
   0x1   :  { %15 = vsyncpa [#allocation6], 0 }
   0x2   :  { %16 = vsyncpa [#allocation9], 0 }
   0x3   :  { %17 = vsyncpa [#allocation4], 0 }
   0x4   :  { %18 = vsyncpa [#allocation13], 0  ;;  %s40_s29 = sshll.u32 %s820_s3, 4  ;;  %s678_s30 = smov [#allocation5]   ;;  %s41_s29 = int_to_ptr.hbm [resolvable:$true] %s40_s29 }
   0x5   :  { %s42_s9 = sshll.u32 %s678_s30, 4  ;;  %s66_s12 = sshll.u32 %s822_s5, 4  ;;  %s43_s9 = int_to_ptr.vmem [resolvable:$true] %s42_s9  ;;  %s67_s12 = int_to_ptr.hbm [resolvable:$true] %s66_s12 }
   0x6   :  { %s679_s13 = smov 128   ;;  %s680_s14 = smov 8  }
   0x7   :  { %48 = dma.hbm_to_vmem [thread:$0]  %s41_s29, 4096, %s43_s9, [#allocation6], %s679_s13, %s679_s13, %s680_s14  }
   0x8   :  { %s681_s15 = smov [#allocation8]   ;;  %s27_s3 = sshll.u32 %s819_s2, 4  ;;  %s28_s3 = int_to_ptr.hbm [resolvable:$true] %s27_s3 }
   0x9   :  { %s68_s16 = sshll.u32 %s681_s15, 4  ;;  %s53_s20 = sshll.u32 %s821_s4, 4  ;;  %s69_s16 = int_to_ptr.vmem [resolvable:$true] %s68_s16  ;;  %s54_s20 = int_to_ptr.hbm [resolvable:$true] %s53_s20 }
   0xa   :  { %74 = dma.hbm_to_vmem [thread:$0]  %s67_s12, 2048, %s69_s16, [#allocation9], %s679_s13, %s679_s13, %s680_s14  }
   0xb   :  { %s682_s21 = smov [#allocation2]   ;;  %s683_s23 = smov [#allocation7]  }
   0xc   :  { %s29_s22 = sshll.u32 %s682_s21, 4  ;;  %s55_s2 = sshll.u32 %s683_s23, 4  ;;  %s30_s22 = int_to_ptr.vmem [resolvable:$true] %s29_s22  ;;  %s56_s2 = int_to_ptr.vmem [resolvable:$true] %s55_s2 }
   0xd   :  { %35 = dma.hbm_to_vmem [thread:$0]  %s28_s3, 256, %s30_s22, [#allocation3], %s679_s13, %s679_s13, %s680_s14  }
   0xe   :  { %s79_s26 = sshll.u32 %s823_s6, 4  ;;  %s684_s4 = smov [#allocation10]   ;;  %s80_s26 = int_to_ptr.hbm [resolvable:$true] %s79_s26 }
   0xf   :  { %61 = dma.hbm_to_vmem [thread:$0]  %s54_s20, 2048, %s56_s2, [#allocation6], %s679_s13, %s679_s13, %s680_s14  }
  0x10   :  { %s81_s27 = sshll.u32 %s684_s4, 4  ;;  %s82_s27 = int_to_ptr.vmem [resolvable:$true] %s81_s27 }
  0x11   :  { %87 = dma.hbm_to_vmem [thread:$0]  %s80_s26, 2048, %s82_s27, [#allocation9], %s679_s13, %s679_s13, %s680_s14  }
  0x12   :  { %668 = dma.done.wait [#allocation3], 256  }
  0x13   :  { %669 = vsyncadd [#allocation3], 4294967040 }
  0x14   :  { %670 = dma.done.wait [#allocation6], 6144  }
  0x15   :  { %671 = vsyncadd [#allocation6], 4294961152 }
  0x16   :  { %672 = dma.done.wait [#allocation9], 4096  }
  0x17   :  { %673 = vsyncadd [#allocation9], 4294963200  ;;  %v157_v0 = vld [vmem:[#allocation7 + $0x78] sm:$0xff]  ;;  %v156_v1 = vld [vmem:[#allocation7 + $0x70] sm:$0xff]  ;;  %v685_v45 = vmov 0   ;;  %v226_v50 = vlaneseq  ;;  %s456_s11 = sshll.u32 %s825_s8, 4  ;;  %s457_s11 = int_to_ptr.hbm [resolvable:$true] %s456_s11 }
  0x18   :  { %158 = vmatpush.msra.mxu1 %v157_v0  ;;  %v155_v2 = vld [vmem:[#allocation7 + $0x68] sm:$0xff]  ;;  %v154_v3 = vld [vmem:[#allocation7 + $0x60] sm:$0xff]  ;;  %v153_v4 = vld [vmem:[#allocation7 + $0x58] sm:$0xff]  ;;  %486 = vset.pattern.permute.xlu0 %v685_v45  ;;  %s687_s12 = smov [#allocation11]   ;;  %s443_s17 = sshll.u32 %s824_s7, 4  ;;  %s444_s17 = int_to_ptr.hbm [resolvable:$true] %s443_s17 }
  0x19   :  { %v152_v5 = vld [vmem:[#allocation7 + $0x50] sm:$0xff]  ;;  %v125_v6 = vld [vmem:[#allocation5 + $0x78] sm:$0xff]  ;;  %v151_v8 = vld [vmem:[#allocation7 + $0x48] sm:$0xff]  ;;  %487 = vset.pattern.permute.xlu1 %v685_v45  ;;  %v227_v52 = vshrl.u32 %v226_v50, 7  ;;  %s441_s15 = sshll.u32 %s687_s12, 4  ;;  %s442_s15 = int_to_ptr.vmem [resolvable:$true] %s441_s15 }
  0x1a   :  { %159 = vmatpush.msra.mxu1 %v156_v1  ;;  %v141_v7 = vld [vmem:[#allocation5 + $0xf8] sm:$0xff]  ;;  %315 = vmatpush.msra.mxu3 %v125_v6  ;;  %v124_v9 = vld [vmem:[#allocation5 + $0x70] sm:$0xff]  ;;  %v150_v10 = vld [vmem:[#allocation7 + $0x40] sm:$0xff]  ;;  %v231_v1 = vand.u32 127, %v226_v50 }
  0x1b   :  { %201 = vmatpush.xpose.msra.mxu2 %v141_v7  ;;  %335 = vmatpush.msra.mxu0 %v141_v7  ;;  %v123_v11 = vld [vmem:[#allocation5 + $0x68] sm:$0xff]  ;;  %v140_v12 = vld [vmem:[#allocation5 + $0xf0] sm:$0xff]  ;;  %v149_v13 = vld [vmem:[#allocation7 + $0x38] sm:$0xff] }
  0x1c   :  { %160 = vmatpush.msra.mxu1 %v155_v2  ;;  %316 = vmatpush.msra.mxu3 %v124_v9  ;;  %v763_v14 = vld [vmem:[#allocation5 + $0x60] sm:$0xff]  ;;  %v148_v15 = vld [vmem:[#allocation7 + $0x30] sm:$0xff]  ;;  %v766_v16 = vld [vmem:[#allocation5 + $0x58] sm:$0xff]  ;;  %vm276_vm8 = vcmp.lt.s32.totalorder %v231_v1, 8 }
  0x1d   :  { %336 = vmatpush.msra.mxu0 %v140_v12  ;;  %v139_v17 = vld [vmem:[#allocation5 + $0xe8] sm:$0xff]  ;;  %v769_v19 = vld [vmem:[#allocation5 + $0x50] sm:$0xff]  ;;  %v146_v20 = vld [vmem:[#allocation7 + $0x20] sm:$0xff] }
  0x1e   :  { %161 = vmatpush.msra.mxu1 %v154_v3  ;;  %317 = vmatpush.msra.mxu3 %v123_v11  ;;  %v147_v18 = vld [vmem:[#allocation7 + $0x28] sm:$0xff]  ;;  %v138_v21 = vld [vmem:[#allocation5 + $0xe0] sm:$0xff]  ;;  %v145_v23 = vld [vmem:[#allocation7 + $0x18] sm:$0xff] }
  0x1f   :  { %202 = vmatpush.xpose.msra.mxu2 %v140_v12  ;;  %337 = vmatpush.msra.mxu0 %v139_v17  ;;  %v772_v22 = vld [vmem:[#allocation5 + $0x48] sm:$0xff]  ;;  %v144_v24 = vld [vmem:[#allocation7 + $0x10] sm:$0xff]  ;;  %v137_v25 = vld [vmem:[#allocation5 + $0xd8] sm:$0xff] }
  0x20   :  { %162 = vmatpush.msra.mxu1 %v153_v4  ;;  %318 = vmatpush.msra.mxu3 %v763_v14  ;;  %v775_v26 = vld [vmem:[#allocation5 + $0x40] sm:$0xff]  ;;  %v143_v27 = vld [vmem:[#allocation7 + $0x8] sm:$0xff]  ;;  %v108_v29 = vld [vmem:[#allocation2] sm:$0xff] }
  0x21   :  { %338 = vmatpush.msra.mxu0 %v138_v21  ;;  %v142_v28 = vld [vmem:[#allocation7] sm:$0xff]  ;;  %v136_v30 = vld [vmem:[#allocation5 + $0xd0] sm:$0xff]  ;;  %v117_v31 = vld [vmem:[#allocation5 + $0x38] sm:$0xff] }
  0x22   :  { %163 = vmatpush.msra.mxu1 %v152_v5  ;;  %319 = vmatpush.msra.mxu3 %v766_v16  ;;  %v135_v32 = vld [vmem:[#allocation5 + $0xc8] sm:$0xff]  ;;  %v116_v33 = vld [vmem:[#allocation5 + $0x30] sm:$0xff]  ;;  %v109_v34 = vld [vmem:[#allocation2 + $0x8] sm:$0xff] }
  0x23   :  { %203 = vmatpush.xpose.msra.mxu2 %v139_v17  ;;  %339 = vmatpush.msra.mxu0 %v137_v25  ;;  %v134_v35 = vld [vmem:[#allocation5 + $0xc0] sm:$0xff]  ;;  %v115_v36 = vld [vmem:[#allocation5 + $0x28] sm:$0xff]  ;;  %v133_v37 = vld [vmem:[#allocation5 + $0xb8] sm:$0xff] }
  0x24   :  { %164 = vmatpush.msra.mxu1 %v151_v8  ;;  %320 = vmatpush.msra.mxu3 %v769_v19  ;;  %v114_v38 = vld [vmem:[#allocation5 + $0x20] sm:$0xff]  ;;  %v132_v39 = vld [vmem:[#allocation5 + $0xb0] sm:$0xff]  ;;  %v113_v40 = vld [vmem:[#allocation5 + $0x18] sm:$0xff] }
  0x25   :  { %340 = vmatpush.msra.mxu0 %v136_v30  ;;  %v131_v41 = vld [vmem:[#allocation5 + $0xa8] sm:$0xff]  ;;  %v112_v42 = vld [vmem:[#allocation5 + $0x10] sm:$0xff]  ;;  %v130_v43 = vld [vmem:[#allocation5 + $0xa0] sm:$0xff] }
  0x26   :  { %165 = vmatpush.msra.mxu1 %v150_v10  ;;  %321 = vmatpush.msra.mxu3 %v772_v22  ;;  %v223_v44 = vld [vmem:[%s818_s1] sm:$0x3]  ;;  %v111_v46 = vld [vmem:[#allocation5 + $0x8] sm:$0xff]  ;;  %v129_v47 = vld [vmem:[#allocation5 + $0x98] sm:$0xff] }
  0x27   :  { %204 = vmatpush.xpose.msra.mxu2 %v138_v21  ;;  %341 = vmatpush.msra.mxu0 %v135_v32  ;;  %v110_v48 = vld [vmem:[#allocation5] sm:$0xff]  ;;  %v128_v49 = vld [vmem:[#allocation5 + $0x90] sm:$0xff]  ;;  %v127_v55 = vld [vmem:[#allocation5 + $0x88] sm:$0xff]  ;;  %v224_v56 = vrot.slane %v223_v44, 1 }
  0x28   :  { %166 = vmatpush.msra.mxu1 %v149_v13  ;;  %322 = vmatpush.msra.mxu3 %v775_v26  ;;  %v221_v51 = vld [vmem:[%s817_s0] sm:$0x3]  ;;  %v126_v57 = vld [vmem:[#allocation5 + $0x80] sm:$0xff]  ;;  %v386_v10 = vld [vmem:[#allocation10 + $0x78] sm:$0xff]  ;;  %s686_s0 = smov [#allocation12]  }
  0x29   :  { %342 = vmatpush.msra.mxu0 %v134_v35  ;;  %237 = vperm.xlu0 %486, %v223_v44   ;;  %v232_v53 = vperm.slane %v221_v51, 0  ;;  %v222_v58 = vrot.slane %v221_v51, 1  ;;  %v366_v44 = vld [vmem:[#allocation8 + $0x58] sm:$0xff]  ;;  %v364_v51 = vld [vmem:[#allocation8 + $0x48] sm:$0xff]  ;;  %s454_s30 = sshll.u32 %s686_s0, 4  ;;  %s455_s30 = int_to_ptr.vmem [resolvable:$true] %s454_s30 }
  0x2a   :  { %167 = vmatpush.msra.mxu1 %v148_v15  ;;  %323 = vmatpush.msra.mxu3 %v117_v31 }
  0x2b   :  { %205 = vmatpush.xpose.msra.mxu2 %v137_v25  ;;  %343 = vmatpush.msra.mxu0 %v133_v37  ;;  %vm234_vm0 = vcmp.lt.s32.totalorder %v227_v52, %v232_v53  ;;  %v233_v59 = vperm.slane %v222_v58, 0  ;;  %v381_v25 = vld [vmem:[#allocation10 + $0x50] sm:$0xff] }
  0x2c   :  { %168 = vmatpush.msra.mxu1 %v147_v18  ;;  %324 = vmatpush.msra.mxu3 %v116_v33  ;;  %v246_v54 = vsel %vm234_vm0, 1, %v685_v45  ;;  %v361_v58 = vld [vmem:[#allocation8 + $0x30] sm:$0xff] }
  0x2d   :  { %344 = vmatpush.msra.mxu0 %v132_v39  ;;  %241 = vperm.xlu1 %487, %v224_v56   ;;  %vm235_vm1 = vcmp.lt.s32.totalorder %v227_v52, %v233_v59 }
  0x2e   :  { %169 = vmatpush.msra.mxu1 %v146_v20  ;;  %325 = vmatpush.msra.mxu3 %v115_v36  ;;  %v247_v60 = vsel %vm235_vm1, 1, %v685_v45 }
  0x2f   :  { %206 = vmatpush.xpose.msra.mxu2 %v136_v30  ;;  %345 = vmatpush.msra.mxu0 %v131_v41  ;;  %v376_v30 = vld [vmem:[#allocation10 + $0x28] sm:$0xff] }
  0x30   :  { %170 = vmatpush.msra.mxu1 %v145_v23  ;;  %326 = vmatpush.msra.mxu3 %v114_v38  ;;  %v383_v23 = vld [vmem:[#allocation10 + $0x60] sm:$0xff] }
  0x31   :  { %346 = vmatpush.msra.mxu0 %v130_v43  ;;  %249 = vperm.xlu0 %486, %v246_v54   ;;  %v363_v54 = vld [vmem:[#allocation8 + $0x40] sm:$0xff] }
  0x32   :  { %171 = vmatpush.msra.mxu1 %v144_v24  ;;  %327 = vmatpush.msra.mxu3 %v113_v40  ;;  %v382_v24 = vld [vmem:[#allocation10 + $0x58] sm:$0xff] }
  0x33   :  { %207 = vmatpush.xpose.msra.mxu2 %v135_v32  ;;  %347 = vmatpush.msra.mxu0 %v129_v47  ;;  %v374_v32 = vld [vmem:[#allocation10 + $0x18] sm:$0xff] }
  0x34   :  { %172 = vmatpush.msra.mxu1 %v143_v27  ;;  %328 = vmatpush.msra.mxu3 %v112_v42  ;;  %v379_v27 = vld [vmem:[#allocation10 + $0x40] sm:$0xff] }
  0x35   :  { %348 = vmatpush.msra.mxu0 %v128_v49  ;;  %252 = vperm.xlu1 %487, %v247_v60  }
  0x36   :  { %173 = vmatpush.msra.mxu1 %v142_v28  ;;  %329 = vmatpush.msra.mxu3 %v111_v46  ;;  %v378_v28 = vld [vmem:[#allocation10 + $0x38] sm:$0xff] }
  0x37   :  { %174 = vmatmul.f32.vlgmr.msra.gmra.mxu1 %v108_v29  ;;  %208 = vmatpush.xpose.msra.mxu2 %v134_v35  ;;  %v377_v29 = vld [vmem:[#allocation10 + $0x30] sm:$0xff]  ;;  %v371_v35 = vld [vmem:[#allocation10] sm:$0xff] }
  0x38   :  { %181 = vmatpush.xpose.msrb.mxu1 %v125_v6  ;;  %330 = vmatpush.msra.mxu3 %v110_v48 }
  0x39   :  { %349 = vmatpush.msra.mxu0 %v127_v55 }
  0x3a   :  { %387 = vmatpush.msrb.mxu3 %v386_v10  ;;  %v356_v10 = vld [vmem:[#allocation8 + $0x8] sm:$0xff] }
  0x3b   :  { %209 = vmatpush.xpose.msra.mxu2 %v133_v37  ;;  %350 = vmatpush.msra.mxu0 %v126_v57  ;;  %v370_v37 = vld [vmem:[#allocation8 + $0x78] sm:$0xff] }
  0x3c   :  { %182 = vmatpush.xpose.msrb.mxu1 %v124_v9 }
  0x3d   :  { %410 = vmatpush.msrb.mxu0 %v370_v37 }
  0x3f   :  { %177 = vmatmul.f32.gmra.mxu1 %v109_v34  ;;  %210 = vmatpush.xpose.msra.mxu2 %v132_v39  ;;  %v372_v34 = vld [vmem:[#allocation10 + $0x8] sm:$0xff] }
  0x40   :  { %183 = vmatpush.xpose.msrb.mxu1 %v123_v11  ;;  %v385_v11 = vld [vmem:[#allocation10 + $0x70] sm:$0xff]  ;;  %v368_v39 = vld [vmem:[#allocation8 + $0x68] sm:$0xff] }
  0x41   :  { %388 = vmatpush.msrb.mxu3 %v385_v11 }
  0x43   :  { %211 = vmatpush.xpose.msra.mxu2 %v131_v41 }
  0x44   :  { %184 = vmatpush.xpose.msrb.mxu1 %v763_v14 }
  0x47   :  { %212 = vmatpush.xpose.msra.mxu2 %v130_v43 }
  0x48   :  { %185 = vmatpush.xpose.msrb.mxu1 %v766_v16 }
  0x4b   :  { %213 = vmatpush.xpose.msra.mxu2 %v129_v47 }
  0x4c   :  { %186 = vmatpush.xpose.msrb.mxu1 %v769_v19 }
  0x4f   :  { %214 = vmatpush.xpose.msra.mxu2 %v128_v49 }
  0x50   :  { %187 = vmatpush.xpose.msrb.mxu1 %v772_v22  ;;  %v384_v22 = vld [vmem:[#allocation10 + $0x68] sm:$0xff] }
  0x51   :  { %389 = vmatpush.msrb.mxu3 %v384_v22 }
  0x53   :  { %215 = vmatpush.xpose.msra.mxu2 %v127_v55  ;;  %390 = vmatpush.msrb.mxu3 %v383_v23 }
  0x54   :  { %188 = vmatpush.xpose.msrb.mxu1 %v775_v26  ;;  %v380_v26 = vld [vmem:[#allocation10 + $0x48] sm:$0xff] }
  0x55   :  { %391 = vmatpush.msrb.mxu3 %v382_v24 }
  0x57   :  { %216 = vmatpush.xpose.msra.mxu2 %v126_v57  ;;  %392 = vmatpush.msrb.mxu3 %v381_v25  ;;  %v362_v57 = vld [vmem:[#allocation8 + $0x38] sm:$0xff] }
  0x58   :  { %189 = vmatpush.xpose.msrb.mxu1 %v117_v31  ;;  %v375_v31 = vld [vmem:[#allocation10 + $0x20] sm:$0xff] }
  0x59   :  { %393 = vmatpush.msrb.mxu3 %v380_v26 }
  0x5b   :  { %394 = vmatpush.msrb.mxu3 %v379_v27 }
  0x5c   :  { %190 = vmatpush.xpose.msrb.mxu1 %v116_v33  ;;  %v373_v33 = vld [vmem:[#allocation10 + $0x10] sm:$0xff] }
  0x5d   :  { %395 = vmatpush.msrb.mxu3 %v378_v28 }
  0x5f   :  { %396 = vmatpush.msrb.mxu3 %v377_v29 }
  0x60   :  { %191 = vmatpush.xpose.msrb.mxu1 %v115_v36 }
  0x61   :  { %397 = vmatpush.msrb.mxu3 %v376_v30 }
  0x63   :  { %398 = vmatpush.msrb.mxu3 %v375_v31 }
  0x64   :  { %192 = vmatpush.xpose.msrb.mxu1 %v114_v38  ;;  %v369_v38 = vld [vmem:[#allocation8 + $0x70] sm:$0xff] }
  0x65   :  { %399 = vmatpush.msrb.mxu3 %v374_v32  ;;  %411 = vmatpush.msrb.mxu0 %v369_v38 }
  0x67   :  { %400 = vmatpush.msrb.mxu3 %v373_v33  ;;  %412 = vmatpush.msrb.mxu0 %v368_v39 }
  0x68   :  { %193 = vmatpush.xpose.msrb.mxu1 %v113_v40 }
  0x69   :  { %401 = vmatpush.msrb.mxu3 %v372_v34 }
  0x6b   :  { %402 = vmatpush.msrb.mxu3 %v371_v35 }
  0x6c   :  { %194 = vmatpush.xpose.msrb.mxu1 %v112_v42  ;;  %v367_v42 = vld [vmem:[#allocation8 + $0x60] sm:$0xff] }
  0x6d   :  { %413 = vmatpush.msrb.mxu0 %v367_v42 }
  0x6f   :  { %414 = vmatpush.msrb.mxu0 %v366_v44 }
  0x70   :  { %195 = vmatpush.xpose.msrb.mxu1 %v111_v46 }
  0x74   :  { %196 = vmatpush.xpose.msrb.mxu1 %v110_v48  ;;  %v365_v48 = vld [vmem:[#allocation8 + $0x50] sm:$0xff] }
  0x75   :  { %415 = vmatpush.msrb.mxu0 %v365_v48 }
  0x77   :  { %416 = vmatpush.msrb.mxu0 %v364_v51 }
  0x79   :  { %417 = vmatpush.msrb.mxu0 %v363_v54 }
  0x7b   :  { %418 = vmatpush.msrb.mxu0 %v362_v57 }
  0x7d   :  { %419 = vmatpush.msrb.mxu0 %v361_v58 }
  0x9b   :  { %v238_v63 = vpop.permute.xlu0 %237 }
  0x9c   :  { %v239_v0 = vperm.slane %v238_v63, 0  ;;  %v360_v63 = vld [vmem:[#allocation8 + $0x28] sm:$0xff] }
  0x9d   :  { %420 = vmatpush.msrb.mxu0 %v360_v63 }
  0x9e   :  { %vm244_vm3 = vcmp.lt.s32.totalorder %v231_v1, %v239_v0 }
  0x9f   :  { %v242_v3 = vpop.permute.xlu1 %241 }
  0xa0   :  { %v243_v6 = vperm.slane %v242_v3, 0 }
  0xa2   :  { %vm245_vm6 = vcmp.lt.s32.totalorder %v231_v1, %v243_v6  ;;  %v359_v1 = vld [vmem:[#allocation8 + $0x20] sm:$0xff] }
  0xa3   :  { %v250_v2 = vpop.permute.xlu0 %249  ;;  %421 = vmatpush.msrb.mxu0 %v359_v1 }
  0xa4   :  { %vm254_vm2 = vcmp.eq.s32.totalorder %v250_v2, 1 }
  0xa5   :  { %vm260_vm4 = vmand %vm254_vm2, %vm244_vm3 }
  0xa7   :  { %v253_v7 = vpop.permute.xlu1 %252 }
  0xa8   :  { %vm255_vm5 = vcmp.eq.s32.totalorder %v253_v7, 1  ;;  %v357_v7 = vld [vmem:[#allocation8 + $0x10] sm:$0xff] }
  0xa9   :  { %vm261_vm7 = vmand %vm255_vm5, %vm245_vm6 }
  0xb4   :  { %v789_v61 = vpop.f32.mrf.mxu1 }
  0xb5   :  { %197 = vmatmul.f32.vlgmr.msrb.gmra.mxu1 %v789_v61 }
  0xbc   :  { %v792_v62 = vpop.f32.mrf.mxu1 }
  0xbd   :  { %217 = vmatmul.f32.vlgmr.msra.gmra.mxu2 %v792_v62 }
 0x132   :  { %v198_v4 = vpop.f32.mrf.mxu1 }
 0x133   :  { %v262_v5 = vsel %vm260_vm4, %v198_v4, -1e+09 }
 0x134   :  { %264 = vst [vmem:[#allocation12] sm:$0xff] %v262_v5  ;;  %266 = vmax.xlane.f32.xlu2 %v262_v5 }
 0x140   :  { %v218_v8 = vpop.f32.mrf.mxu2 }
 0x141   :  { %v263_v9 = vsel %vm261_vm7, %v218_v8, -1e+09 }
 0x142   :  { %265 = vst [vmem:[#allocation12 + $0x8] sm:$0xff] %v263_v9  ;;  %268 = vmax.xlane.f32.xlu2 %v263_v9 }
 0x143   :  { %462 = dma.vmem_to_hbm [thread:$0]  %s455_s30, 256, %s457_s11, [#allocation13], %s679_s13, %s679_s13, %s680_s14  }
 0x1a7   :  { %v267_v12 = vpop.xlane.xlu2 %266 }
 0x1a8   :  { %v270_v13 = vsub.f32 %v262_v5, %v267_v12  ;;  %v358_v5 = vld [vmem:[#allocation8 + $0x18] sm:$0xff] }
 0x1a9   :  { %422 = vmatpush.msrb.mxu0 %v358_v5 }
 0x1aa   :  { %v272_v14 = vmul.f32 1.442695, %v270_v13  ;;  %v355_v13 = vld [vmem:[#allocation8] sm:$0xff] }
 0x1ab   :  { %423 = vmatpush.msrb.mxu0 %v357_v7 }
 0x1ac   :  { %488 = vpow2.f32 %v272_v14 }
 0x1ad   :  { %424 = vmatpush.msrb.mxu0 %v356_v10 }
 0x1af   :  { %425 = vmatpush.msrb.mxu0 %v355_v13 }
 0x1b2   :  { %v489_v15 = vpop.eup %488 }
 0x1b3   :  { %v795_v16 = vsel %vm276_vm8, %v489_v15, 0.0 }
 0x1b4   :  { %281 = vadd.xlane.f32.xlu0 %v795_v16 }
 0x1b5   :  { %v269_v17 = vpop.xlane.xlu2 %268 }
 0x1b6   :  { %v271_v18 = vsub.f32 %v263_v9, %v269_v17 }
 0x1b8   :  { %v274_v19 = vmul.f32 1.442695, %v271_v18 }
 0x1ba   :  { %490 = vpow2.f32 %v274_v19 }
 0x1c0   :  { %v491_v20 = vpop.eup %490 }
 0x1c1   :  { %v798_v21 = vsel %vm276_vm8, %v491_v20, 0.0 }
 0x1c2   :  { %283 = vadd.xlane.f32.xlu1 %v798_v21 }
 0x227   :  { %v282_v36 = vpop.xlane.xlu0 %281 }
 0x228   :  { %492 = vrcp.f32 %v282_v36  ;;  %v296_v45 = vand.u32 2147483648, %v282_v36  ;;  %v294_v47 = vand.u32 2147483647, %v282_v36  ;;  %vm290_vm10 = vweird.f32 %v282_v36 }
 0x22a   :  { %v297_v52 = vor.u32 1.1754944e-38, %v296_v45  ;;  %vm295_vm12 = vcmp.eq.f32.partialorder %v294_v47, 8.507059e+37 }
 0x22e   :  { %v493_v40 = vpop.eup %492 }
 0x22f   :  { %v286_v41 = vmul.f32 %v493_v40, %v282_v36  ;;  %vm291_vm9 = vweird.f32 %v493_v40 }
 0x230   :  { %vm292_vm11 = vmor %vm290_vm10, %vm291_vm9 }
 0x231   :  { %v287_v43 = vsub.f32 1.0, %v286_v41 }
 0x233   :  { %v288_v46 = vmul.f32 %v493_v40, %v287_v43 }
 0x235   :  { %v284_v49 = vpop.xlane.xlu1 %283  ;;  %v289_v50 = vadd.f32 %v493_v40, %v288_v46 }
 0x236   :  { %494 = vrcp.f32 %v284_v49  ;;  %v311_v2 = vand.u32 2147483648, %v284_v49  ;;  %v309_v4 = vand.u32 2147483647, %v284_v49  ;;  %vm305_vm14 = vweird.f32 %v284_v49 }
 0x237   :  { %v293_v53 = vsel %vm292_vm11, %v493_v40, %v289_v50 }
 0x238   :  { %v298_v55 = vsel %vm295_vm12, %v297_v52, %v293_v53  ;;  %v312_v8 = vor.u32 1.1754944e-38, %v311_v2  ;;  %vm310_vm0 = vcmp.eq.f32.partialorder %v309_v4, 8.507059e+37 }
 0x239   :  { %v299_v56 = vmul.f32 %v298_v55, %v795_v16 }
 0x23b   :  { %331 = vmatmul.f32.vlgmr.msra.gmra.mxu3 %v299_v56 }
 0x23c   :  { %v495_v59 = vpop.eup %494 }
 0x23d   :  { %v301_v60 = vmul.f32 %v495_v59, %v284_v49  ;;  %vm306_vm13 = vweird.f32 %v495_v59 }
 0x23e   :  { %vm307_vm15 = vmor %vm305_vm14, %vm306_vm13 }
 0x23f   :  { %v302_v0 = vsub.f32 1.0, %v301_v60 }
 0x241   :  { %v303_v3 = vmul.f32 %v495_v59, %v302_v0 }
 0x243   :  { %403 = vmatmul.f32.vlgmr.msrb.gmra.mxu3 %v789_v61  ;;  %v304_v6 = vadd.f32 %v495_v59, %v303_v3 }
 0x245   :  { %v308_v9 = vsel %vm307_vm15, %v495_v59, %v304_v6 }
 0x246   :  { %v313_v11 = vsel %vm310_vm0, %v312_v8, %v308_v9 }
 0x247   :  { %v314_v12 = vmul.f32 %v313_v11, %v798_v21 }
 0x249   :  { %351 = vmatmul.f32.vlgmr.msra.gmra.mxu0 %v314_v12 }
 0x24b   :  { %406 = vmatmul.f32.gmra.mxu3 %v792_v62 }
 0x2be   :  { %v332_v14 = vpop.f32.mrf.mxu3 }
 0x2bf   :  { %426 = vmatmul.f32.vlgmr.msrb.gmra.mxu0 %v332_v14 }
 0x2c6   :  { %v352_v61 = vpop.f32.mrf.mxu0  ;;  %v404_v15 = vpop.f32.mrf.mxu3 }
 0x2c7   :  { %429 = vmatmul.f32.gmra.mxu0 %v352_v61 }
 0x2ce   :  { %v407_v17 = vpop.f32.mrf.mxu3 }
 0x33c   :  { %v427_v62 = vpop.f32.mrf.mxu0 }
 0x33d   :  { %v428_v16 = vadd.f32 %v427_v62, %v404_v15 }
 0x33f   :  { %496 = vtanh.f32 %v428_v16 }
 0x344   :  { %v430_v18 = vpop.f32.mrf.mxu0 }
 0x345   :  { %v497_v19 = vpop.eup %496  ;;  %v431_v20 = vadd.f32 %v430_v18, %v407_v17 }
 0x346   :  { %435 = vst [vmem:[#allocation11] sm:$0xff] %v497_v19 }
 0x347   :  { %498 = vtanh.f32 %v431_v20 }
 0x34d   :  { %v499_v21 = vpop.eup %498 }
 0x34e   :  { %436 = vst [vmem:[#allocation11 + $0x8] sm:$0xff] %v499_v21 }
 0x34f   :  { %449 = dma.vmem_to_hbm [thread:$0]  %s442_s15, 256, %s444_s17, [#allocation4], %s679_s13, %s679_s13, %s680_s14  }
 0x350   :  { %674 = dma.done.wait [#allocation4], 256  }
 0x351   :  { %675 = vsyncadd [#allocation4], 4294967040 }
 0x352   :  { %676 = dma.done.wait [#allocation13], 256  }
 0x353   :  { %677 = vsyncadd [#allocation13], 4294967040 }
 0x354   :  { %471 = vsyncpa [#allocation3], 1 }
 0x355   :  { %472 = vsyncpa [#allocation6], 1 }
 0x356   :  { %473 = vsyncpa [#allocation9], 1 }
 0x357   :  { %474 = vsyncpa [#allocation4], 1 }
 0x358   :  { %475 = vsyncpa [#allocation13], 1 }

</bundles_post_ra>
